<compile_context>
chip_gen: v7x
topology: tpu7x:2x2x1
jax: 0.10.0
libtpu: 0.0.40
codegen_flags: <defaults>
</compile_context>

<pallas_src>
import numpy as np
import jax
import jax.numpy as jnp
from jax.experimental import pallas as pl
from jax.experimental.pallas import tpu as pltpu


def lstm_decoder_kernel(dec_ref, enc_ref, w_ih_ref, w_hh_ref, b_g_ref,
                        w_fc_ref, b_fc_ref, w_fin_ref, b_fin_ref,
                        out_ref, hid_ref):
    # dec_ref:  (T, N*L)        enc_ref:  (T, F)
    # w_ih_ref: (N*L, 4*N*E)    w_hh_ref: (N*E, 4*N*E)   b_g_ref: (1, 4*N*E)
    # w_fc_ref: (N*E, F)        b_fc_ref: (1, F)
    # w_fin_ref:(2F, C)         b_fin_ref:(1, C)
    # out_ref:  (T, C)          hid_ref (scratch): (T, N*E)
    T = dec_ref.shape[0]
    NE = hid_ref.shape[-1]            # N * E (= 128 here)
    F = w_fc_ref.shape[-1]

    # Hoisted input projection for all timesteps at once (off the serial chain):
    # (T, N*L) @ (N*L, 4*N*E) + b  ->  (T, 4*N*E)
    gx = jnp.dot(dec_ref[...], w_ih_ref[...],
                 preferred_element_type=jnp.float32) + b_g_ref[...]

    # Hoist the recurrent weight load out of the loop (stays resident in vregs/VMEM view).
    w_hh = w_hh_ref[...]              # (N*E, 4*N*E)

    h = jnp.zeros((1, NE), jnp.float32)
    c = jnp.zeros((1, NE), jnp.float32)

    # Static unroll: T is small & static; gives the LLO scheduler full cross-step visibility.
    for t in range(T):
        # One recurrent matmul per step: (1, N*E) @ (N*E, 4*N*E) -> (1, 4*N*E)
        gates = gx[t:t + 1, :] + jnp.dot(h, w_hh,
                                         preferred_element_type=jnp.float32)
        sg = jax.nn.sigmoid(gates)    # one full-width EUP pass
        th = jnp.tanh(gates)          # one full-width EUP pass
        i = sg[:, 0 * NE:1 * NE]      # gate-major lane layout: i | f | g | o
        f = sg[:, 1 * NE:2 * NE]
        g = th[:, 2 * NE:3 * NE]
        o = sg[:, 3 * NE:4 * NE]
        c = f * c + i * g
        h = o * jnp.tanh(c)
        # Single lane-dense (1, 128) store per step (off the critical path).
        hid_ref[pl.ds(t, 1), :] = h

    # rnn_fc: one K = N*E (=128) matmul over the whole hidden stash.
    fc = jnp.dot(hid_ref[...], w_fc_ref[...],
                 preferred_element_type=jnp.float32) + b_fc_ref[...]

    # final_layer(concat([enc_out, fc], dim=1)) as a split matmul (avoids in-kernel concat).
    out = (jnp.dot(enc_ref[...], w_fin_ref[0:F, :], preferred_element_type=jnp.float32)
           + jnp.dot(fc, w_fin_ref[F:2 * F, :], preferred_element_type=jnp.float32)
           + b_fin_ref[...])
    # TODO(synk): nn.Dropout is identity at inference; training-mode random mask not implemented.
    out_ref[...] = out.astype(out_ref.dtype)


def pack_params(w_ih, w_hh, b_ih, b_hh, w_fc, b_fc, w_fin, b_fin,
                num_features, embedding_dim, max_len):
    """Repack PyTorch-layout weights into the fused flat/block layout used by the kernel."""
    N, E, L = num_features, embedding_dim, max_len
    NE = N * E
    w_ih_np = np.asarray(w_ih, np.float32)        # (4E, L), gate order i|f|g|o
    w_hh_np = np.asarray(w_hh, np.float32)        # (4E, E)

    w_ih_big = np.zeros((N * L, 4 * NE), np.float32)
    w_hh_bd = np.zeros((NE, 4 * NE), np.float32)
    for g in range(4):
        wi_g = w_ih_np[g * E:(g + 1) * E, :].T    # (L, E)
        wh_g = w_hh_np[g * E:(g + 1) * E, :].T    # (E, E)
        for n in range(N):                        # block-diagonal placement per feature
            c0 = g * NE + n * E
            w_ih_big[n * L:(n + 1) * L, c0:c0 + E] = wi_g
            w_hh_bd[n * E:(n + 1) * E, c0:c0 + E] = wh_g

    b_gate = np.asarray(b_ih, np.float32) + np.asarray(b_hh, np.float32)    # (4E,)
    b_flat = np.concatenate([np.tile(b_gate[g * E:(g + 1) * E], N) for g in range(4)])

    return (jnp.asarray(w_ih_big),                                   # (N*L, 4*N*E)
            jnp.asarray(w_hh_bd),                                    # (N*E, 4*N*E)
            jnp.asarray(b_flat.reshape(1, 4 * NE)),                  # (1, 4*N*E)
            jnp.asarray(np.asarray(w_fc, np.float32).T),             # (N*E, F)
            jnp.asarray(np.asarray(b_fc, np.float32).reshape(1, -1)),
            jnp.asarray(np.asarray(w_fin, np.float32).T),            # (2F, C)
            jnp.asarray(np.asarray(b_fin, np.float32).reshape(1, -1)))


def lstm_decoder_forward(dec_inp, enc_out, packed):
    w_ih_big, w_hh_bd, b_flat, w_fc_t, b_fc2, w_fin_t, b_fin2 = packed
    T, N, L = dec_inp.shape
    NE = w_hh_bd.shape[0]
    C = w_fin_t.shape[-1]
    dec_flat = dec_inp.reshape(T, N * L)          # host-side flatten (free)
    vmem = pl.BlockSpec(memory_space=pltpu.MemorySpace.VMEM)
    # NOTE(v7x): if multiple independent (dec_inp, enc_out) sequences are ever batched, add a
    # leading "parallel" grid axis over that batch to use both TensorCores; a single sequence's
    # recurrence is inherently serial.
    return pl.pallas_call(
        lstm_decoder_kernel,
        out_shape=jax.ShapeDtypeStruct((T, C), jnp.float32),
        in_specs=[vmem] * 9,
        out_specs=vmem,
        scratch_shapes=[pltpu.VMEM((T, NE), jnp.float32)],
    )(dec_flat, enc_out, w_ih_big, w_hh_bd, b_flat, w_fc_t, b_fc2, w_fin_t, b_fin2)


if __name__ == "__main__":
    # Module hyperparameters: max_len=L, embedding_dim=E, num_features=N, class_n=C
    T, N, L, E, F, C = 8, 4, 16, 32, 1000, 10

    key = jax.random.PRNGKey(0)
    keys = jax.random.split(key, 10)
    s = 0.1
    # PyTorch-layout parameters (deterministic synthetic init)
    w_ih = (jax.random.normal(keys[0], (4 * E, L)) * s).astype(jnp.float32)   # lstm.weight_ih_l0
    w_hh = (jax.random.normal(keys[1], (4 * E, E)) * s).astype(jnp.float32)   # lstm.weight_hh_l0
    b_ih = (jax.random.normal(keys[2], (4 * E,)) * s).astype(jnp.float32)     # lstm.bias_ih_l0
    b_hh = (jax.random.normal(keys[3], (4 * E,)) * s).astype(jnp.float32)     # lstm.bias_hh_l0
    w_fc = (jax.random.normal(keys[4], (F, N * E)) * s).astype(jnp.float32)   # rnn_fc.weight
    b_fc = (jax.random.normal(keys[5], (F,)) * s).astype(jnp.float32)         # rnn_fc.bias
    w_fin = (jax.random.normal(keys[6], (C, 2 * F)) * s).astype(jnp.float32)  # final_layer.weight
    b_fin = (jax.random.normal(keys[7], (C,)) * s).astype(jnp.float32)        # final_layer.bias

    dec_inp = jax.random.normal(keys[8], (T, N, L), jnp.float32)
    enc_out = jax.random.normal(keys[9], (T, F), jnp.float32)

    packed = pack_params(w_ih, w_hh, b_ih, b_hh, w_fc, b_fc, w_fin, b_fin, N, E, L)

    out = lstm_decoder_forward(dec_inp, enc_out, packed)
    out = jax.block_until_ready(out)

    # Pure-JAX reference (mirrors PyTorch semantics exactly; dropout = eval-mode identity)
    def reference():
        hi = jax.lax.Precision.HIGHEST

        def step(carry, x_t):
            h, c = carry
            gates = (jnp.dot(x_t, w_ih.T, precision=hi)
                     + jnp.dot(h, w_hh.T, precision=hi) + b_ih + b_hh)
            i = jax.nn.sigmoid(gates[:, 0 * E:1 * E])
            f = jax.nn.sigmoid(gates[:, 1 * E:2 * E])
            g = jnp.tanh(gates[:, 2 * E:3 * E])
            o = jax.nn.sigmoid(gates[:, 3 * E:4 * E])
            c = f * c + i * g
            h = o * jnp.tanh(c)
            return (h, c), h

        init = (jnp.zeros((N, E), jnp.float32), jnp.zeros((N, E), jnp.float32))
        _, hs = jax.lax.scan(step, init, dec_inp)                # (T, N, E)
        fc = jnp.dot(hs.reshape(T, N * E), w_fc.T, precision=hi) + b_fc
        concat = jnp.concatenate([enc_out, fc], axis=1)
        return jnp.dot(concat, w_fin.T, precision=hi) + b_fin

    ref = jax.block_until_ready(reference())
    np.testing.assert_allclose(np.asarray(out), np.asarray(ref), rtol=2e-3, atol=2e-3)
    print("KERNEL_OK")
</pallas_src>

<mosaic_0001>
module attributes {stable_mosaic.version = 11 : i64} {
  func.func @lstm_decoder_kernel(%arg0: memref<8x64xf32, #tpu.memory_space<vmem>>, %arg1: memref<8x1000xf32, #tpu.memory_space<vmem>>, %arg2: memref<64x512xf32, #tpu.memory_space<vmem>>, %arg3: memref<128x512xf32, #tpu.memory_space<vmem>>, %arg4: memref<1x512xf32, #tpu.memory_space<vmem>>, %arg5: memref<128x1000xf32, #tpu.memory_space<vmem>>, %arg6: memref<1x1000xf32, #tpu.memory_space<vmem>>, %arg7: memref<2000x10xf32, #tpu.memory_space<vmem>>, %arg8: memref<1x10xf32, #tpu.memory_space<vmem>>, %arg9: memref<8x10xf32, #tpu.memory_space<vmem>>, %arg10: memref<8x128xf32, #tpu.memory_space<vmem>>) attributes {dimension_semantics = [], scalar_prefetch = 0 : i64, scratch_operands = 1 : i64, tpu.core_type = #tpu.core_type<tc>} {
    %c0 = arith.constant 0 : index
    %c0_0 = arith.constant 0 : index
    %0 = vector.load %arg0[%c0, %c0_0] : memref<8x64xf32, #tpu.memory_space<vmem>>, vector<8x64xf32>
    %c0_1 = arith.constant 0 : index
    %c0_2 = arith.constant 0 : index
    %1 = vector.load %arg2[%c0_1, %c0_2] : memref<64x512xf32, #tpu.memory_space<vmem>>, vector<64x512xf32>
    %cst = arith.constant dense<0.000000e+00> : vector<8x512xf32>
    %2 = tpu.matmul %0, %1, %cst {dimension_numbers = #tpu.dot_dimension_numbers<[1], [0], [0], [1], [0, 0, 1, 1], [], []>} : vector<8x64xf32>, vector<64x512xf32>, vector<8x512xf32> -> vector<8x512xf32>
    %c0_3 = arith.constant 0 : index
    %c0_4 = arith.constant 0 : index
    %3 = vector.load %arg4[%c0_3, %c0_4] : memref<1x512xf32, #tpu.memory_space<vmem>>, vector<1x512xf32>
    %4 = vector.broadcast %3 : vector<1x512xf32> to vector<8x512xf32>
    %5 = arith.addf %2, %4 : vector<8x512xf32>
    %c0_5 = arith.constant 0 : index
    %c0_6 = arith.constant 0 : index
    %6 = vector.load %arg3[%c0_5, %c0_6] : memref<128x512xf32, #tpu.memory_space<vmem>>, vector<128x512xf32>
    %cst_7 = arith.constant 0.000000e+00 : f32
    %7 = vector.broadcast %cst_7 : f32 to vector<1x128xf32>
    %cst_8 = arith.constant 0.000000e+00 : f32
    %8 = vector.broadcast %cst_8 : f32 to vector<1x128xf32>
    %9 = vector.extract_strided_slice %5 {offsets = [0, 0], sizes = [1, 512], strides = [1, 1]} : vector<8x512xf32> to vector<1x512xf32>
    %cst_9 = arith.constant dense<0.000000e+00> : vector<1x512xf32>
    %10 = tpu.matmul %7, %6, %cst_9 {dimension_numbers = #tpu.dot_dimension_numbers<[1], [0], [0], [1], [0, 0, 1, 1], [], []>} : vector<1x128xf32>, vector<128x512xf32>, vector<1x512xf32> -> vector<1x512xf32>
    %11 = arith.addf %9, %10 : vector<1x512xf32>
    %12 = arith.negf %11 : vector<1x512xf32>
    %13 = math.exp %12 : vector<1x512xf32>
    %cst_10 = arith.constant 1.000000e+00 : f32
    %14 = vector.broadcast %cst_10 : f32 to vector<1x512xf32>
    %15 = arith.addf %14, %13 : vector<1x512xf32>
    %16 = arith.divf %14, %15 : vector<1x512xf32>
    %17 = math.tanh %11 : vector<1x512xf32>
    %18 = vector.extract_strided_slice %16 {offsets = [0, 0], sizes = [1, 128], strides = [1, 1]} : vector<1x512xf32> to vector<1x128xf32>
    %19 = vector.extract_strided_slice %16 {offsets = [0, 128], sizes = [1, 128], strides = [1, 1]} : vector<1x512xf32> to vector<1x128xf32>
    %20 = vector.extract_strided_slice %17 {offsets = [0, 256], sizes = [1, 128], strides = [1, 1]} : vector<1x512xf32> to vector<1x128xf32>
    %21 = vector.extract_strided_slice %16 {offsets = [0, 384], sizes = [1, 128], strides = [1, 1]} : vector<1x512xf32> to vector<1x128xf32>
    %22 = arith.mulf %19, %8 : vector<1x128xf32>
    %23 = arith.mulf %18, %20 : vector<1x128xf32>
    %24 = arith.addf %22, %23 : vector<1x128xf32>
    %25 = math.tanh %24 : vector<1x128xf32>
    %26 = arith.mulf %21, %25 : vector<1x128xf32>
    %c0_11 = arith.constant 0 : index
    %c0_12 = arith.constant 0 : index
    %27 = vector.load %arg10[%c0_11, %c0_12] : memref<8x128xf32, #tpu.memory_space<vmem>>, vector<1x128xf32>
    tpu.vector_store %arg10[%c0_11, %c0_12], %26 {strides = array<i32>} : memref<8x128xf32, #tpu.memory_space<vmem>>, vector<1x128xf32>,
    %28 = vector.extract_strided_slice %5 {offsets = [1, 0], sizes = [1, 512], strides = [1, 1]} : vector<8x512xf32> to vector<1x512xf32>
    %cst_13 = arith.constant dense<0.000000e+00> : vector<1x512xf32>
    %29 = tpu.matmul %26, %6, %cst_13 {dimension_numbers = #tpu.dot_dimension_numbers<[1], [0], [0], [1], [0, 0, 1, 1], [], []>} : vector<1x128xf32>, vector<128x512xf32>, vector<1x512xf32> -> vector<1x512xf32>
    %30 = arith.addf %28, %29 : vector<1x512xf32>
    %31 = arith.negf %30 : vector<1x512xf32>
    %32 = math.exp %31 : vector<1x512xf32>
    %cst_14 = arith.constant 1.000000e+00 : f32
    %33 = vector.broadcast %cst_14 : f32 to vector<1x512xf32>
    %34 = arith.addf %33, %32 : vector<1x512xf32>
    %35 = arith.divf %33, %34 : vector<1x512xf32>
    %36 = math.tanh %30 : vector<1x512xf32>
    %37 = vector.extract_strided_slice %35 {offsets = [0, 0], sizes = [1, 128], strides = [1, 1]} : vector<1x512xf32> to vector<1x128xf32>
    %38 = vector.extract_strided_slice %35 {offsets = [0, 128], sizes = [1, 128], strides = [1, 1]} : vector<1x512xf32> to vector<1x128xf32>
    %39 = vector.extract_strided_slice %36 {offsets = [0, 256], sizes = [1, 128], strides = [1, 1]} : vector<1x512xf32> to vector<1x128xf32>
    %40 = vector.extract_strided_slice %35 {offsets = [0, 384], sizes = [1, 128], strides = [1, 1]} : vector<1x512xf32> to vector<1x128xf32>
    %41 = arith.mulf %38, %24 : vector<1x128xf32>
    %42 = arith.mulf %37, %39 : vector<1x128xf32>
    %43 = arith.addf %41, %42 : vector<1x128xf32>
    %44 = math.tanh %43 : vector<1x128xf32>
    %45 = arith.mulf %40, %44 : vector<1x128xf32>
    %c1 = arith.constant 1 : index
    %c0_15 = arith.constant 0 : index
    %46 = vector.load %arg10[%c1, %c0_15] : memref<8x128xf32, #tpu.memory_space<vmem>>, vector<1x128xf32>
    tpu.vector_store %arg10[%c1, %c0_15], %45 {strides = array<i32>} : memref<8x128xf32, #tpu.memory_space<vmem>>, vector<1x128xf32>,
    %47 = vector.extract_strided_slice %5 {offsets = [2, 0], sizes = [1, 512], strides = [1, 1]} : vector<8x512xf32> to vector<1x512xf32>
    %cst_16 = arith.constant dense<0.000000e+00> : vector<1x512xf32>
    %48 = tpu.matmul %45, %6, %cst_16 {dimension_numbers = #tpu.dot_dimension_numbers<[1], [0], [0], [1], [0, 0, 1, 1], [], []>} : vector<1x128xf32>, vector<128x512xf32>, vector<1x512xf32> -> vector<1x512xf32>
    %49 = arith.addf %47, %48 : vector<1x512xf32>
    %50 = arith.negf %49 : vector<1x512xf32>
    %51 = math.exp %50 : vector<1x512xf32>
    %cst_17 = arith.constant 1.000000e+00 : f32
    %52 = vector.broadcast %cst_17 : f32 to vector<1x512xf32>
    %53 = arith.addf %52, %51 : vector<1x512xf32>
    %54 = arith.divf %52, %53 : vector<1x512xf32>
    %55 = math.tanh %49 : vector<1x512xf32>
    %56 = vector.extract_strided_slice %54 {offsets = [0, 0], sizes = [1, 128], strides = [1, 1]} : vector<1x512xf32> to vector<1x128xf32>
    %57 = vector.extract_strided_slice %54 {offsets = [0, 128], sizes = [1, 128], strides = [1, 1]} : vector<1x512xf32> to vector<1x128xf32>
    %58 = vector.extract_strided_slice %55 {offsets = [0, 256], sizes = [1, 128], strides = [1, 1]} : vector<1x512xf32> to vector<1x128xf32>
    %59 = vector.extract_strided_slice %54 {offsets = [0, 384], sizes = [1, 128], strides = [1, 1]} : vector<1x512xf32> to vector<1x128xf32>
    %60 = arith.mulf %57, %43 : vector<1x128xf32>
    %61 = arith.mulf %56, %58 : vector<1x128xf32>
    %62 = arith.addf %60, %61 : vector<1x128xf32>
    %63 = math.tanh %62 : vector<1x128xf32>
    %64 = arith.mulf %59, %63 : vector<1x128xf32>
    %c2 = arith.constant 2 : index
    %c0_18 = arith.constant 0 : index
    %65 = vector.load %arg10[%c2, %c0_18] : memref<8x128xf32, #tpu.memory_space<vmem>>, vector<1x128xf32>
    tpu.vector_store %arg10[%c2, %c0_18], %64 {strides = array<i32>} : memref<8x128xf32, #tpu.memory_space<vmem>>, vector<1x128xf32>,
    %66 = vector.extract_strided_slice %5 {offsets = [3, 0], sizes = [1, 512], strides = [1, 1]} : vector<8x512xf32> to vector<1x512xf32>
    %cst_19 = arith.constant dense<0.000000e+00> : vector<1x512xf32>
    %67 = tpu.matmul %64, %6, %cst_19 {dimension_numbers = #tpu.dot_dimension_numbers<[1], [0], [0], [1], [0, 0, 1, 1], [], []>} : vector<1x128xf32>, vector<128x512xf32>, vector<1x512xf32> -> vector<1x512xf32>
    %68 = arith.addf %66, %67 : vector<1x512xf32>
    %69 = arith.negf %68 : vector<1x512xf32>
    %70 = math.exp %69 : vector<1x512xf32>
    %cst_20 = arith.constant 1.000000e+00 : f32
    %71 = vector.broadcast %cst_20 : f32 to vector<1x512xf32>
    %72 = arith.addf %71, %70 : vector<1x512xf32>
    %73 = arith.divf %71, %72 : vector<1x512xf32>
    %74 = math.tanh %68 : vector<1x512xf32>
    %75 = vector.extract_strided_slice %73 {offsets = [0, 0], sizes = [1, 128], strides = [1, 1]} : vector<1x512xf32> to vector<1x128xf32>
    %76 = vector.extract_strided_slice %73 {offsets = [0, 128], sizes = [1, 128], strides = [1, 1]} : vector<1x512xf32> to vector<1x128xf32>
    %77 = vector.extract_strided_slice %74 {offsets = [0, 256], sizes = [1, 128], strides = [1, 1]} : vector<1x512xf32> to vector<1x128xf32>
    %78 = vector.extract_strided_slice %73 {offsets = [0, 384], sizes = [1, 128], strides = [1, 1]} : vector<1x512xf32> to vector<1x128xf32>
    %79 = arith.mulf %76, %62 : vector<1x128xf32>
    %80 = arith.mulf %75, %77 : vector<1x128xf32>
    %81 = arith.addf %79, %80 : vector<1x128xf32>
    %82 = math.tanh %81 : vector<1x128xf32>
    %83 = arith.mulf %78, %82 : vector<1x128xf32>
    %c3 = arith.constant 3 : index
    %c0_21 = arith.constant 0 : index
    %84 = vector.load %arg10[%c3, %c0_21] : memref<8x128xf32, #tpu.memory_space<vmem>>, vector<1x128xf32>
    tpu.vector_store %arg10[%c3, %c0_21], %83 {strides = array<i32>} : memref<8x128xf32, #tpu.memory_space<vmem>>, vector<1x128xf32>,
    %85 = vector.extract_strided_slice %5 {offsets = [4, 0], sizes = [1, 512], strides = [1, 1]} : vector<8x512xf32> to vector<1x512xf32>
    %cst_22 = arith.constant dense<0.000000e+00> : vector<1x512xf32>
    %86 = tpu.matmul %83, %6, %cst_22 {dimension_numbers = #tpu.dot_dimension_numbers<[1], [0], [0], [1], [0, 0, 1, 1], [], []>} : vector<1x128xf32>, vector<128x512xf32>, vector<1x512xf32> -> vector<1x512xf32>
    %87 = arith.addf %85, %86 : vector<1x512xf32>
    %88 = arith.negf %87 : vector<1x512xf32>
    %89 = math.exp %88 : vector<1x512xf32>
    %cst_23 = arith.constant 1.000000e+00 : f32
    %90 = vector.broadcast %cst_23 : f32 to vector<1x512xf32>
    %91 = arith.addf %90, %89 : vector<1x512xf32>
    %92 = arith.divf %90, %91 : vector<1x512xf32>
    %93 = math.tanh %87 : vector<1x512xf32>
    %94 = vector.extract_strided_slice %92 {offsets = [0, 0], sizes = [1, 128], strides = [1, 1]} : vector<1x512xf32> to vector<1x128xf32>
    %95 = vector.extract_strided_slice %92 {offsets = [0, 128], sizes = [1, 128], strides = [1, 1]} : vector<1x512xf32> to vector<1x128xf32>
    %96 = vector.extract_strided_slice %93 {offsets = [0, 256], sizes = [1, 128], strides = [1, 1]} : vector<1x512xf32> to vector<1x128xf32>
    %97 = vector.extract_strided_slice %92 {offsets = [0, 384], sizes = [1, 128], strides = [1, 1]} : vector<1x512xf32> to vector<1x128xf32>
    %98 = arith.mulf %95, %81 : vector<1x128xf32>
    %99 = arith.mulf %94, %96 : vector<1x128xf32>
    %100 = arith.addf %98, %99 : vector<1x128xf32>
    %101 = math.tanh %100 : vector<1x128xf32>
    %102 = arith.mulf %97, %101 : vector<1x128xf32>
    %c4 = arith.constant 4 : index
    %c0_24 = arith.constant 0 : index
    %103 = vector.load %arg10[%c4, %c0_24] : memref<8x128xf32, #tpu.memory_space<vmem>>, vector<1x128xf32>
    tpu.vector_store %arg10[%c4, %c0_24], %102 {strides = array<i32>} : memref<8x128xf32, #tpu.memory_space<vmem>>, vector<1x128xf32>,
    %104 = vector.extract_strided_slice %5 {offsets = [5, 0], sizes = [1, 512], strides = [1, 1]} : vector<8x512xf32> to vector<1x512xf32>
    %cst_25 = arith.constant dense<0.000000e+00> : vector<1x512xf32>
    %105 = tpu.matmul %102, %6, %cst_25 {dimension_numbers = #tpu.dot_dimension_numbers<[1], [0], [0], [1], [0, 0, 1, 1], [], []>} : vector<1x128xf32>, vector<128x512xf32>, vector<1x512xf32> -> vector<1x512xf32>
    %106 = arith.addf %104, %105 : vector<1x512xf32>
    %107 = arith.negf %106 : vector<1x512xf32>
    %108 = math.exp %107 : vector<1x512xf32>
    %cst_26 = arith.constant 1.000000e+00 : f32
    %109 = vector.broadcast %cst_26 : f32 to vector<1x512xf32>
    %110 = arith.addf %109, %108 : vector<1x512xf32>
    %111 = arith.divf %109, %110 : vector<1x512xf32>
    %112 = math.tanh %106 : vector<1x512xf32>
    %113 = vector.extract_strided_slice %111 {offsets = [0, 0], sizes = [1, 128], strides = [1, 1]} : vector<1x512xf32> to vector<1x128xf32>
    %114 = vector.extract_strided_slice %111 {offsets = [0, 128], sizes = [1, 128], strides = [1, 1]} : vector<1x512xf32> to vector<1x128xf32>
    %115 = vector.extract_strided_slice %112 {offsets = [0, 256], sizes = [1, 128], strides = [1, 1]} : vector<1x512xf32> to vector<1x128xf32>
    %116 = vector.extract_strided_slice %111 {offsets = [0, 384], sizes = [1, 128], strides = [1, 1]} : vector<1x512xf32> to vector<1x128xf32>
    %117 = arith.mulf %114, %100 : vector<1x128xf32>
    %118 = arith.mulf %113, %115 : vector<1x128xf32>
    %119 = arith.addf %117, %118 : vector<1x128xf32>
    %120 = math.tanh %119 : vector<1x128xf32>
    %121 = arith.mulf %116, %120 : vector<1x128xf32>
    %c5 = arith.constant 5 : index
    %c0_27 = arith.constant 0 : index
    %122 = vector.load %arg10[%c5, %c0_27] : memref<8x128xf32, #tpu.memory_space<vmem>>, vector<1x128xf32>
    tpu.vector_store %arg10[%c5, %c0_27], %121 {strides = array<i32>} : memref<8x128xf32, #tpu.memory_space<vmem>>, vector<1x128xf32>,
    %123 = vector.extract_strided_slice %5 {offsets = [6, 0], sizes = [1, 512], strides = [1, 1]} : vector<8x512xf32> to vector<1x512xf32>
    %cst_28 = arith.constant dense<0.000000e+00> : vector<1x512xf32>
    %124 = tpu.matmul %121, %6, %cst_28 {dimension_numbers = #tpu.dot_dimension_numbers<[1], [0], [0], [1], [0, 0, 1, 1], [], []>} : vector<1x128xf32>, vector<128x512xf32>, vector<1x512xf32> -> vector<1x512xf32>
    %125 = arith.addf %123, %124 : vector<1x512xf32>
    %126 = arith.negf %125 : vector<1x512xf32>
    %127 = math.exp %126 : vector<1x512xf32>
    %cst_29 = arith.constant 1.000000e+00 : f32
    %128 = vector.broadcast %cst_29 : f32 to vector<1x512xf32>
    %129 = arith.addf %128, %127 : vector<1x512xf32>
    %130 = arith.divf %128, %129 : vector<1x512xf32>
    %131 = math.tanh %125 : vector<1x512xf32>
    %132 = vector.extract_strided_slice %130 {offsets = [0, 0], sizes = [1, 128], strides = [1, 1]} : vector<1x512xf32> to vector<1x128xf32>
    %133 = vector.extract_strided_slice %130 {offsets = [0, 128], sizes = [1, 128], strides = [1, 1]} : vector<1x512xf32> to vector<1x128xf32>
    %134 = vector.extract_strided_slice %131 {offsets = [0, 256], sizes = [1, 128], strides = [1, 1]} : vector<1x512xf32> to vector<1x128xf32>
    %135 = vector.extract_strided_slice %130 {offsets = [0, 384], sizes = [1, 128], strides = [1, 1]} : vector<1x512xf32> to vector<1x128xf32>
    %136 = arith.mulf %133, %119 : vector<1x128xf32>
    %137 = arith.mulf %132, %134 : vector<1x128xf32>
    %138 = arith.addf %136, %137 : vector<1x128xf32>
    %139 = math.tanh %138 : vector<1x128xf32>
    %140 = arith.mulf %135, %139 : vector<1x128xf32>
    %c6 = arith.constant 6 : index
    %c0_30 = arith.constant 0 : index
    %141 = vector.load %arg10[%c6, %c0_30] : memref<8x128xf32, #tpu.memory_space<vmem>>, vector<1x128xf32>
    tpu.vector_store %arg10[%c6, %c0_30], %140 {strides = array<i32>} : memref<8x128xf32, #tpu.memory_space<vmem>>, vector<1x128xf32>,
    %142 = vector.extract_strided_slice %5 {offsets = [7, 0], sizes = [1, 512], strides = [1, 1]} : vector<8x512xf32> to vector<1x512xf32>
    %cst_31 = arith.constant dense<0.000000e+00> : vector<1x512xf32>
    %143 = tpu.matmul %140, %6, %cst_31 {dimension_numbers = #tpu.dot_dimension_numbers<[1], [0], [0], [1], [0, 0, 1, 1], [], []>} : vector<1x128xf32>, vector<128x512xf32>, vector<1x512xf32> -> vector<1x512xf32>
    %144 = arith.addf %142, %143 : vector<1x512xf32>
    %145 = arith.negf %144 : vector<1x512xf32>
    %146 = math.exp %145 : vector<1x512xf32>
    %cst_32 = arith.constant 1.000000e+00 : f32
    %147 = vector.broadcast %cst_32 : f32 to vector<1x512xf32>
    %148 = arith.addf %147, %146 : vector<1x512xf32>
    %149 = arith.divf %147, %148 : vector<1x512xf32>
    %150 = math.tanh %144 : vector<1x512xf32>
    %151 = vector.extract_strided_slice %149 {offsets = [0, 0], sizes = [1, 128], strides = [1, 1]} : vector<1x512xf32> to vector<1x128xf32>
    %152 = vector.extract_strided_slice %149 {offsets = [0, 128], sizes = [1, 128], strides = [1, 1]} : vector<1x512xf32> to vector<1x128xf32>
    %153 = vector.extract_strided_slice %150 {offsets = [0, 256], sizes = [1, 128], strides = [1, 1]} : vector<1x512xf32> to vector<1x128xf32>
    %154 = vector.extract_strided_slice %149 {offsets = [0, 384], sizes = [1, 128], strides = [1, 1]} : vector<1x512xf32> to vector<1x128xf32>
    %155 = arith.mulf %152, %138 : vector<1x128xf32>
    %156 = arith.mulf %151, %153 : vector<1x128xf32>
    %157 = arith.addf %155, %156 : vector<1x128xf32>
    %158 = math.tanh %157 : vector<1x128xf32>
    %159 = arith.mulf %154, %158 : vector<1x128xf32>
    %c7 = arith.constant 7 : index
    %c0_33 = arith.constant 0 : index
    %160 = vector.load %arg10[%c7, %c0_33] : memref<8x128xf32, #tpu.memory_space<vmem>>, vector<1x128xf32>
    tpu.vector_store %arg10[%c7, %c0_33], %159 {strides = array<i32>} : memref<8x128xf32, #tpu.memory_space<vmem>>, vector<1x128xf32>,
    %c0_34 = arith.constant 0 : index
    %c0_35 = arith.constant 0 : index
    %161 = vector.load %arg10[%c0_34, %c0_35] : memref<8x128xf32, #tpu.memory_space<vmem>>, vector<8x128xf32>
    %c0_36 = arith.constant 0 : index
    %c0_37 = arith.constant 0 : index
    %162 = vector.load %arg5[%c0_36, %c0_37] : memref<128x1000xf32, #tpu.memory_space<vmem>>, vector<128x1000xf32>
    %cst_38 = arith.constant dense<0.000000e+00> : vector<8x1000xf32>
    %163 = tpu.matmul %161, %162, %cst_38 {dimension_numbers = #tpu.dot_dimension_numbers<[1], [0], [0], [1], [0, 0, 1, 1], [], []>} : vector<8x128xf32>, vector<128x1000xf32>, vector<8x1000xf32> -> vector<8x1000xf32>
    %c0_39 = arith.constant 0 : index
    %c0_40 = arith.constant 0 : index
    %164 = vector.load %arg6[%c0_39, %c0_40] : memref<1x1000xf32, #tpu.memory_space<vmem>>, vector<1x1000xf32>
    %165 = vector.broadcast %164 : vector<1x1000xf32> to vector<8x1000xf32>
    %166 = arith.addf %163, %165 : vector<8x1000xf32>
    %c0_41 = arith.constant 0 : index
    %c0_42 = arith.constant 0 : index
    %167 = vector.load %arg1[%c0_41, %c0_42] : memref<8x1000xf32, #tpu.memory_space<vmem>>, vector<8x1000xf32>
    %c0_43 = arith.constant 0 : index
    %c0_44 = arith.constant 0 : index
    %168 = vector.load %arg7[%c0_43, %c0_44] : memref<2000x10xf32, #tpu.memory_space<vmem>>, vector<1000x10xf32>
    %cst_45 = arith.constant dense<0.000000e+00> : vector<8x10xf32>
    %169 = tpu.matmul %167, %168, %cst_45 {dimension_numbers = #tpu.dot_dimension_numbers<[1], [0], [0], [1], [0, 0, 1, 1], [], []>} : vector<8x1000xf32>, vector<1000x10xf32>, vector<8x10xf32> -> vector<8x10xf32>
    %c1000 = arith.constant 1000 : index
    %c0_46 = arith.constant 0 : index
    %170 = vector.load %arg7[%c1000, %c0_46] : memref<2000x10xf32, #tpu.memory_space<vmem>>, vector<1000x10xf32>
    %cst_47 = arith.constant dense<0.000000e+00> : vector<8x10xf32>
    %171 = tpu.matmul %166, %170, %cst_47 {dimension_numbers = #tpu.dot_dimension_numbers<[1], [0], [0], [1], [0, 0, 1, 1], [], []>} : vector<8x1000xf32>, vector<1000x10xf32>, vector<8x10xf32> -> vector<8x10xf32>
    %172 = arith.addf %169, %171 : vector<8x10xf32>
    %c0_48 = arith.constant 0 : index
    %c0_49 = arith.constant 0 : index
    %173 = vector.load %arg8[%c0_48, %c0_49] : memref<1x10xf32, #tpu.memory_space<vmem>>, vector<1x10xf32>
    %174 = vector.broadcast %173 : vector<1x10xf32> to vector<8x10xf32>
    %175 = arith.addf %172, %174 : vector<8x10xf32>
    %c0_50 = arith.constant 0 : index
    %c0_51 = arith.constant 0 : index
    %176 = vector.load %arg9[%c0_50, %c0_51] : memref<8x10xf32, #tpu.memory_space<vmem>>, vector<8x10xf32>
    tpu.vector_store %arg9[%c0_50, %c0_51], %175 {strides = array<i32>} : memref<8x10xf32, #tpu.memory_space<vmem>>, vector<8x10xf32>,
    return
  }
}

</mosaic_0001>

<bundles_post_ra>
// kernel: tpu_custom_call.1
= control target key start
LH: loop header
LB: loop body
LE: loop exit
PB: predicated region body
PF: predicated region fallthrough
CT: control target
= control target key end

     0   :  { %v4435_v7 = vmov 0.0   ;;  %vm88_vm0 = vcmask 523264   ;;  %s6453_s0 = inlined_call_operand.vmem [shape: f32[8,64], index: 0, kind: input, shape index: {}]   ;;  %s6454_s1 = inlined_call_operand.vmem [shape: f32[8,1000], index: 1, kind: input, shape index: {}]   ;;  %s6455_s2 = inlined_call_operand.vmem [shape: f32[64,512], index: 2, kind: input, shape index: {}]   ;;  %s6456_s3 = inlined_call_operand.vmem [shape: f32[128,512], index: 3, kind: input, shape index: {}]   ;;  %s6457_s4 = inlined_call_operand.vmem [shape: f32[1,512], index: 4, kind: input, shape index: {}]   ;;  %s6458_s5 = inlined_call_operand.vmem [shape: f32[128,1000], index: 5, kind: input, shape index: {}]   ;;  %s6459_s6 = inlined_call_operand.vmem [shape: f32[1,1000], index: 6, kind: input, shape index: {}]   ;;  %s6460_s7 = inlined_call_operand.vmem [shape: f32[2000,10], index: 7, kind: input, shape index: {}]   ;;  %s6461_s8 = inlined_call_operand.vmem [shape: f32[1,10], index: 8, kind: input, shape index: {}]   ;;  %s6462_s9 = inlined_call_operand.hbm [shape: f32[8,10], index: 9, kind: output, shape index: {}]  }
   0x1   :  { %v35_v0 = vld [vmem:[%s6455_s2 + $0x8] sm:$0xff]  ;;  %v34_v2 = vld [vmem:[%s6455_s2] sm:$0xff]  ;;  %156 = vmatprep.mubr.f32.mxu0 %v4435_v7  ;;  %227 = vmatprep.mubr.f32.mxu1 %v4435_v7  ;;  %v37_v44 = vld [vmem:[%s6455_s2 + $0x18] sm:$0xff] }
   0x2   :  { %v39_v1 = vld [vmem:[%s6455_s2 + $0x28] sm:$0xff]  ;;  %v38_v4 = vld [vmem:[%s6455_s2 + $0x20] sm:$0xff]  ;;  %v41_v45 = vld [vmem:[%s6455_s2 + $0x38] sm:$0xff] }
   0x3   :  { %v3332_v3 = vpack.c.bf16 %v39_v1, %v35_v0  ;;  %v43_v5 = vld [vmem:[%s6455_s2 + $0x48] sm:$0xff]  ;;  %v3334_v8 = vpack.c.bf16 %v38_v4, %v34_v2  ;;  %v42_v10 = vld [vmem:[%s6455_s2 + $0x40] sm:$0xff]  ;;  %v3348_v47 = vpack.c.bf16 %v41_v45, %v37_v44  ;;  %v36_v48 = vld [vmem:[%s6455_s2 + $0x10] sm:$0xff] }
   0x4   :  { %v47_v6 = vld [vmem:[%s6455_s2 + $0x68] sm:$0xff]  ;;  %v46_v11 = vld [vmem:[%s6455_s2 + $0x60] sm:$0xff]  ;;  %v40_v49 = vld [vmem:[%s6455_s2 + $0x30] sm:$0xff] }
   0x5   :  { %v3336_v9 = vpack.c.bf16 %v47_v6, %v43_v5  ;;  %v51_v12 = vld [vmem:[%s6455_s2 + $0x88] sm:$0xff]  ;;  %3333 = vmatprep.subr.bf16.mxu0 %v3332_v3  ;;  %v3338_v14 = vpack.c.bf16 %v46_v11, %v42_v10  ;;  %v50_v16 = vld [vmem:[%s6455_s2 + $0x80] sm:$0xff]  ;;  %v3350_v50 = vpack.c.bf16 %v40_v49, %v36_v48  ;;  %v45_v51 = vld [vmem:[%s6455_s2 + $0x58] sm:$0xff]  ;;  %3349 = vmatprep.subr.bf16.mxu1 %v3348_v47 }
   0x6   :  { %v55_v13 = vld [vmem:[%s6455_s2 + $0xa8] sm:$0xff]  ;;  %3335 = vmatpush1.bf16.msra.mxu0 %v3334_v8  ;;  %v54_v17 = vld [vmem:[%s6455_s2 + $0xa0] sm:$0xff]  ;;  %v49_v55 = vld [vmem:[%s6455_s2 + $0x78] sm:$0xff] }
   0x7   :  { %3337 = vmatprep.subr.bf16.mxu0 %v3336_v9  ;;  %v3340_v15 = vpack.c.bf16 %v55_v13, %v51_v12  ;;  %v59_v18 = vld [vmem:[%s6455_s2 + $0xc8] sm:$0xff]  ;;  %v3342_v20 = vpack.c.bf16 %v54_v17, %v50_v16  ;;  %v58_v22 = vld [vmem:[%s6455_s2 + $0xc0] sm:$0xff]  ;;  %3351 = vmatpush1.bf16.msra.mxu1 %v3350_v50  ;;  %v3352_v58 = vpack.c.bf16 %v49_v55, %v45_v51  ;;  %v44_v59 = vld [vmem:[%s6455_s2 + $0x50] sm:$0xff] }
   0x8   :  { %v63_v19 = vld [vmem:[%s6455_s2 + $0xe8] sm:$0xff]  ;;  %v62_v23 = vld [vmem:[%s6455_s2 + $0xe0] sm:$0xff]  ;;  %v48_v60 = vld [vmem:[%s6455_s2 + $0x70] sm:$0xff] }
   0x9   :  { %v3344_v21 = vpack.c.bf16 %v63_v19, %v59_v18  ;;  %v235_v24 = vld [vmem:[%s6456_s3 + $0x8] sm:$0xff]  ;;  %v3346_v26 = vpack.c.bf16 %v62_v23, %v58_v22  ;;  %v234_v28 = vld [vmem:[%s6456_s3] sm:$0xff]  ;;  %v3354_v62 = vpack.c.bf16 %v48_v60, %v44_v59  ;;  %v53_v63 = vld [vmem:[%s6455_s2 + $0x98] sm:$0xff]  ;;  %3353 = vmatprep.subr.bf16.mxu1 %v3352_v58 }
   0xa   :  { %3339 = vmatpush1.bf16.msra.mxu0 %v3338_v14  ;;  %v239_v25 = vld [vmem:[%s6456_s3 + $0x28] sm:$0xff]  ;;  %v238_v29 = vld [vmem:[%s6456_s3 + $0x20] sm:$0xff]  ;;  %v57_v0 = vld [vmem:[%s6455_s2 + $0xb8] sm:$0xff] }
   0xb   :  { %3341 = vmatprep.subr.bf16.mxu0 %v3340_v15  ;;  %v4544_v27 = vpack.c.bf16 %v239_v25, %v235_v24  ;;  %v243_v30 = vld [vmem:[%s6456_s3 + $0x48] sm:$0xff]  ;;  %v4561_v32 = vld [vmem:[%s6453_s0] sm:$0xff]  ;;  %v4563_v33 = vpack.c.bf16 %v238_v29, %v234_v28  ;;  %v3356_v1 = vpack.c.bf16 %v57_v0, %v53_v63  ;;  %v52_v2 = vld [vmem:[%s6455_s2 + $0x90] sm:$0xff]  ;;  %3355 = vmatpush1.bf16.msra.mxu1 %v3354_v62 }
   0xc   :  { %v247_v31 = vld [vmem:[%s6456_s3 + $0x68] sm:$0xff]  ;;  %v242_v35 = vld [vmem:[%s6456_s3 + $0x40] sm:$0xff]  ;;  %v56_v6 = vld [vmem:[%s6455_s2 + $0xb0] sm:$0xff] }
   0xd   :  { %v4566_v34 = vpack.c.bf16 %v247_v31, %v243_v30  ;;  %v246_v36 = vld [vmem:[%s6456_s3 + $0x60] sm:$0xff]  ;;  %v251_v37 = vld [vmem:[%s6456_s3 + $0x88] sm:$0xff]  ;;  %v3358_v10 = vpack.c.bf16 %v56_v6, %v52_v2  ;;  %v61_v11 = vld [vmem:[%s6455_s2 + $0xd8] sm:$0xff]  ;;  %3357 = vmatprep.subr.bf16.mxu1 %v3356_v1 }
   0xe   :  { %3343 = vmatpush1.bf16.msra.mxu0 %v3342_v20  ;;  %v255_v38 = vld [vmem:[%s6456_s3 + $0xa8] sm:$0xff]  ;;  %v4583_v39 = vpack.c.bf16 %v246_v36, %v242_v35  ;;  %v250_v40 = vld [vmem:[%s6456_s3 + $0x80] sm:$0xff]  ;;  %v65_v12 = vld [vmem:[%s6455_s2 + $0xf8] sm:$0xff] }
   0xf   :  { %3345 = vmatprep.subr.bf16.mxu0 %v3344_v21  ;;  %v254_v41 = vld [vmem:[%s6456_s3 + $0xa0] sm:$0xff]  ;;  %v4593_v42 = vpack.c.bf16 %v255_v38, %v251_v37  ;;  %v259_v43 = vld [vmem:[%s6456_s3 + $0xc8] sm:$0xff]  ;;  %v3360_v14 = vpack.c.bf16 %v65_v12, %v61_v11  ;;  %v60_v15 = vld [vmem:[%s6455_s2 + $0xd0] sm:$0xff] }
  0x10   :  { %v263_v46 = vld [vmem:[%s6456_s3 + $0xe8] sm:$0xff]  ;;  %v4617_v52 = vpack.c.bf16 %v254_v41, %v250_v40  ;;  %v258_v53 = vld [vmem:[%s6456_s3 + $0xc0] sm:$0xff]  ;;  %v64_v16 = vld [vmem:[%s6455_s2 + $0xf0] sm:$0xff] }
  0x11   :  { %v262_v54 = vld [vmem:[%s6456_s3 + $0xe0] sm:$0xff]  ;;  %v4629_v56 = vpack.c.bf16 %v263_v46, %v259_v43  ;;  %v267_v57 = vld [vmem:[%s6456_s3 + $0x108] sm:$0xff] }
  0x12   :  { %3347 = vmatpush1.bf16.msra.mxu0 %v3346_v26  ;;  %v271_v61 = vld [vmem:[%s6456_s3 + $0x128] sm:$0xff]  ;;  %v4653_v3 = vpack.c.bf16 %v262_v54, %v258_v53  ;;  %v266_v4 = vld [vmem:[%s6456_s3 + $0x100] sm:$0xff] }
  0x13   :  { %3365 = vmatprep.subr.bf16.mxu0 %v4544_v27  ;;  %v270_v5 = vld [vmem:[%s6456_s3 + $0x120] sm:$0xff]  ;;  %v4665_v8 = vpack.c.bf16 %v271_v61, %v267_v57  ;;  %v275_v9 = vld [vmem:[%s6456_s3 + $0x148] sm:$0xff] }
  0x14   :  { %v279_v13 = vld [vmem:[%s6456_s3 + $0x168] sm:$0xff]  ;;  %v4686_v17 = vpack.c.bf16 %v270_v5, %v266_v4  ;;  %v274_v18 = vld [vmem:[%s6456_s3 + $0x140] sm:$0xff] }
  0x15   :  { %3093 = vmatmul.mubr.msk.f32.vlgmr.msra.gmra.mrb[0].mxu0 %vm88_vm0, %v4561_v32 }
  0x16   :  { %3367 = vmatpush1.bf16.msra.mxu0 %v4563_v33  ;;  %362 = vmatprep.mubr.f32.mxu0 %v4435_v7 }
  0x17   :  { %3369 = vmatprep.subr.bf16.mxu0 %v4566_v34 }
  0x1a   :  { %3371 = vmatpush1.bf16.msra.mxu0 %v4583_v39 }
  0x1b   :  { %3373 = vmatprep.subr.bf16.mxu0 %v4593_v42 }
  0x1e   :  { %3375 = vmatpush1.bf16.msra.mxu0 %v4617_v52 }
  0x1f   :  { %3377 = vmatprep.subr.bf16.mxu0 %v4629_v56 }
  0x22   :  { %3379 = vmatpush1.bf16.msra.mxu0 %v4653_v3 }
  0x23   :  { %14 = vsyncpa [#allocation4], 0  ;;  %3381 = vmatprep.subr.bf16.mxu0 %v4665_v8  ;;  %v4692_v19 = vpack.c.bf16 %v279_v13, %v275_v9  ;;  %v278_v20 = vld [vmem:[%s6456_s3 + $0x160] sm:$0xff]  ;;  %v237_v21 = vld [vmem:[%s6456_s3 + $0x18] sm:$0xff]  ;;  %3359 = vmatpush1.bf16.msra.mxu1 %v3358_v10  ;;  %v3362_v23 = vpack.c.bf16 %v64_v16, %v60_v15  ;;  %vm2502_vm1 = vcmask 850944   ;;  %s4437_s2 = smov [#allocation3]  }
  0x24   :  { %v241_v22 = vld [vmem:[%s6456_s3 + $0x38] sm:$0xff]  ;;  %v283_v24 = vld [vmem:[%s6456_s3 + $0x188] sm:$0xff]  ;;  %3361 = vmatprep.subr.bf16.mxu1 %v3360_v14  ;;  %v4710_v26 = vpack.c.bf16 %v278_v20, %v274_v18  ;;  %v282_v28 = vld [vmem:[%s6456_s3 + $0x180] sm:$0xff]  ;;  %s3085_s17 = sshll.u32 %s4437_s2, 4  ;;  %vm3077_vm2 = vcmask 80896   ;;  %s3086_s17 = int_to_ptr.vmem [resolvable:$true] %s3085_s17 }
  0x25   :  { %v287_v25 = vld [vmem:[%s6456_s3 + $0x1a8] sm:$0xff]  ;;  %v4715_v29 = vpack.c.bf16 %v241_v22, %v237_v21  ;;  %v236_v30 = vld [vmem:[%s6456_s3 + $0x10] sm:$0xff]  ;;  %v286_v36 = vld [vmem:[%s6456_s3 + $0x1a0] sm:$0xff]  ;;  %s4411_s18 = scalar_lea.vmem %s3086_s17, 128  ;;  %p4416_p1 = scmp.lt.s32.totalorder %s3086_s17, %s3086_s17 }
  0x26   :  { %3383 = vmatpush1.bf16.msra.mxu0 %v4686_v17  ;;  %v240_v31 = vld [vmem:[%s6456_s3 + $0x30] sm:$0xff]  ;;  %v4724_v35 = vpack.c.bf16 %v287_v25, %v283_v24  ;;  %v245_v37 = vld [vmem:[%s6456_s3 + $0x58] sm:$0xff]  ;;  %v291_v40 = vld [vmem:[%s6456_s3 + $0x1c8] sm:$0xff]  ;;  %v4745_v44 = vpack.c.bf16 %v286_v36, %v282_v28  ;;  %p4412_p0 = scmp.ne.s32.totalorder %s3086_s17, %s4411_s18  ;;  %p4417_p2 = scmp.lt.s32.totalorder %s4411_s18, %s4411_s18 }
  0x27   :  { %3385 = vmatprep.subr.bf16.mxu0 %v4692_v19  ;;  %v249_v38 = vld [vmem:[%s6456_s3 + $0x78] sm:$0xff]  ;;  %3363 = vmatpush1.bf16.msra.mxu1 %v3362_v23  ;;  %v295_v41 = vld [vmem:[%s6456_s3 + $0x1e8] sm:$0xff]  ;;  %v4742_v43 = vpack.c.bf16 %v240_v31, %v236_v30  ;;  %v290_v45 = vld [vmem:[%s6456_s3 + $0x1c0] sm:$0xff] }
  0x28   :  { %3461 = vmatprep.subr.bf16.mxu1 %v4715_v29  ;;  %v4750_v46 = vpack.c.bf16 %v249_v38, %v245_v37  ;;  %v244_v47 = vld [vmem:[%s6456_s3 + $0x50] sm:$0xff]  ;;  %v4761_v49 = vpack.c.bf16 %v295_v41, %v291_v40  ;;  %v294_v50 = vld [vmem:[%s6456_s3 + $0x1e0] sm:$0xff]  ;;  %v253_v51 = vld [vmem:[%s6456_s3 + $0x98] sm:$0xff]  ;;  %p4418_p3 = por %p4417_p2, %p4416_p1 }
  0x29   :  { %v248_v48 = vld [vmem:[%s6456_s3 + $0x70] sm:$0xff]  ;;  %v257_v53 = vld [vmem:[%s6456_s3 + $0xb8] sm:$0xff]  ;;  %v4778_v54 = vpack.c.bf16 %v294_v50, %v290_v45  ;;  %v68_v45 = vlaneseq }
  0x2a   :  { %3387 = vmatpush1.bf16.msra.mxu0 %v4710_v26  ;;  %3094 = vmatmul.mubr.msk.f32.vlgmr.msra.gmra.mrb[0].mxu1 %vm88_vm0, %v4561_v32  ;;  %v4775_v32 = vpack.c.bf16 %v248_v48, %v244_v47  ;;  %v4780_v55 = vpack.c.bf16 %v257_v53, %v253_v51  ;;  %v252_v57 = vld [vmem:[%s6456_s3 + $0x90] sm:$0xff]  ;;  %v261_v59 = vld [vmem:[%s6456_s3 + $0xd8] sm:$0xff]  ;;  %v66_v51 = vld [vmem:[%s6457_s4] sm:$0xf]  ;;  %p4419_p4 = pnand %p4418_p3, %p4412_p0 }
  0x2b   :  { %3389 = vmatprep.subr.bf16.mxu0 %v4724_v35  ;;  %3463 = vmatpush1.bf16.msra.mxu1 %v4742_v43  ;;  %v256_v58 = vld [vmem:[%s6456_s3 + $0xb0] sm:$0xff]  ;;  %v265_v60 = vld [vmem:[%s6456_s3 + $0xf8] sm:$0xff]  ;;  %v4923_v48 = vshrl.u32 %v68_v45, 7 }
  0x2c   :  { %3465 = vmatprep.subr.bf16.mxu1 %v4750_v46  ;;  %604 = vmatprep.mubr.f32.mxu1 %v4435_v7  ;;  %v4797_v61 = vpack.c.bf16 %v256_v58, %v252_v57  ;;  %v4800_v62 = vpack.c.bf16 %v265_v60, %v261_v59  ;;  %v260_v63 = vld [vmem:[%s6456_s3 + $0xd0] sm:$0xff]  ;;  %v269_v1 = vld [vmem:[%s6456_s3 + $0x118] sm:$0xff] }
  0x2d   :  { %v264_v0 = vld [vmem:[%s6456_s3 + $0xf0] sm:$0xff]  ;;  %v273_v2 = vld [vmem:[%s6456_s3 + $0x138] sm:$0xff]  ;;  %v74_v50 = vsub.s32 1, %v4923_v48  ;;  %v70_v53 = vsub.s32 0, %v4923_v48 }
  0x2e   :  { %3391 = vmatpush1.bf16.msra.mxu0 %v4745_v44  ;;  %v4818_v4 = vpack.c.bf16 %v264_v0, %v260_v63  ;;  %v4821_v5 = vpack.c.bf16 %v273_v2, %v269_v1  ;;  %v268_v6 = vld [vmem:[%s6456_s3 + $0x110] sm:$0xff]  ;;  %v277_v10 = vld [vmem:[%s6456_s3 + $0x158] sm:$0xff] }
  0x2f   :  { %3393 = vmatprep.subr.bf16.mxu0 %v4761_v49  ;;  %3467 = vmatpush1.bf16.msra.mxu1 %v4775_v32  ;;  %v272_v9 = vld [vmem:[%s6456_s3 + $0x130] sm:$0xff]  ;;  %v281_v11 = vld [vmem:[%s6456_s3 + $0x178] sm:$0xff]  ;;  %v75_v59 = vrot.slane %v66_v51, %v74_v50  ;;  %v71_v60 = vrot.slane %v66_v51, %v70_v53 }
  0x30   :  { %3469 = vmatprep.subr.bf16.mxu1 %v4780_v55  ;;  %v4839_v12 = vpack.c.bf16 %v272_v9, %v268_v6  ;;  %v4842_v13 = vpack.c.bf16 %v281_v11, %v277_v10  ;;  %v276_v14 = vld [vmem:[%s6456_s3 + $0x150] sm:$0xff]  ;;  %v285_v16 = vld [vmem:[%s6456_s3 + $0x198] sm:$0xff]  ;;  %v78_v10 = vsub.s32 2, %v4923_v48  ;;  %v82_v11 = vsub.s32 3, %v4923_v48 }
  0x31   :  { %v280_v15 = vld [vmem:[%s6456_s3 + $0x170] sm:$0xff]  ;;  %v289_v18 = vld [vmem:[%s6456_s3 + $0x1b8] sm:$0xff] }
  0x32   :  { %3395 = vmatpush1.bf16.msra.mxu0 %v4778_v54  ;;  %v4859_v20 = vpack.c.bf16 %v280_v15, %v276_v14  ;;  %v4862_v21 = vpack.c.bf16 %v289_v18, %v285_v16  ;;  %v284_v22 = vld [vmem:[%s6456_s3 + $0x190] sm:$0xff]  ;;  %v293_v24 = vld [vmem:[%s6456_s3 + $0x1d8] sm:$0xff]  ;;  %v79_v14 = vrot.slane %v66_v51, %v78_v10  ;;  %v83_v16 = vrot.slane %v66_v51, %v82_v11 }
  0x33   :  { %3397 = vmatprep.subr.bf16.mxu0 %v4715_v29  ;;  %3471 = vmatpush1.bf16.msra.mxu1 %v4797_v61  ;;  %v288_v23 = vld [vmem:[%s6456_s3 + $0x1b0] sm:$0xff]  ;;  %v297_v25 = vld [vmem:[%s6456_s3 + $0x1f8] sm:$0xff] }
  0x34   :  { %3473 = vmatprep.subr.bf16.mxu1 %v4800_v62  ;;  %v4879_v28 = vpack.c.bf16 %v288_v23, %v284_v22  ;;  %v4882_v30 = vpack.c.bf16 %v297_v25, %v293_v24  ;;  %v292_v31 = vld [vmem:[%s6456_s3 + $0x1d0] sm:$0xff] }
  0x35   :  { %363 = vmatmul.mubr.f32.vlgmr.msra.gmra.mrb[2].mxu0 %v4435_v7  ;;  %v296_v36 = vld [vmem:[%s6456_s3 + $0x1f0] sm:$0xff] }
  0x36   :  { %3399 = vmatpush1.bf16.msra.mxu0 %v4742_v43  ;;  %433 = vmatprep.mubr.f32.mxu0 %v4435_v7  ;;  %v4893_v37 = vpack.c.bf16 %v296_v36, %v292_v31 }
  0x37   :  { %3401 = vmatprep.subr.bf16.mxu0 %v4750_v46  ;;  %3475 = vmatpush1.bf16.msra.mxu1 %v4818_v4 }
  0x38   :  { %3477 = vmatprep.subr.bf16.mxu1 %v4821_v5 }
  0x3a   :  { %3403 = vmatpush1.bf16.msra.mxu0 %v4775_v32 }
  0x3b   :  { %3405 = vmatprep.subr.bf16.mxu0 %v4780_v55  ;;  %3479 = vmatpush1.bf16.msra.mxu1 %v4839_v12 }
  0x3c   :  { %3481 = vmatprep.subr.bf16.mxu1 %v4842_v13 }
  0x3e   :  { %3407 = vmatpush1.bf16.msra.mxu0 %v4797_v61 }
  0x3f   :  { %3409 = vmatprep.subr.bf16.mxu0 %v4800_v62  ;;  %3483 = vmatpush1.bf16.msra.mxu1 %v4859_v20 }
  0x40   :  { %3485 = vmatprep.subr.bf16.mxu1 %v4862_v21 }
  0x42   :  { %3411 = vmatpush1.bf16.msra.mxu0 %v4818_v4 }
  0x43   :  { %3413 = vmatprep.subr.bf16.mxu0 %v4821_v5  ;;  %3487 = vmatpush1.bf16.msra.mxu1 %v4879_v28 }
  0x44   :  { %3489 = vmatprep.subr.bf16.mxu1 %v4882_v30 }
  0x46   :  { %3415 = vmatpush1.bf16.msra.mxu0 %v4839_v12 }
  0x47   :  { %3417 = vmatprep.subr.bf16.mxu0 %v4842_v13  ;;  %3491 = vmatpush1.bf16.msra.mxu1 %v4893_v37 }
  0x48   :  { %3525 = vmatprep.subr.bf16.mxu1 %v4715_v29 }
  0x4a   :  { %3419 = vmatpush1.bf16.msra.mxu0 %v4859_v20 }
  0x4b   :  { %3421 = vmatprep.subr.bf16.mxu0 %v4862_v21 }
  0x4e   :  { %3423 = vmatpush1.bf16.msra.mxu0 %v4879_v28 }
  0x4f   :  { %3425 = vmatprep.subr.bf16.mxu0 %v4882_v30 }
  0x52   :  { %3427 = vmatpush1.bf16.msra.mxu0 %v4893_v37 }
  0x53   :  { %3429 = vmatprep.subr.bf16.mxu0 %v4544_v27 }
  0x55   :  { %434 = vmatmul.mubr.f32.vlgmr.msra.gmra.mrb[4].mxu0 %v4435_v7 }
  0x56   :  { %3431 = vmatpush1.bf16.msra.mxu0 %v4563_v33  ;;  %533 = vmatprep.mubr.f32.mxu0 %v4435_v7 }
  0x57   :  { %3433 = vmatprep.subr.bf16.mxu0 %v4566_v34 }
  0x5a   :  { %3435 = vmatpush1.bf16.msra.mxu0 %v4583_v39 }
  0x5b   :  { %3437 = vmatprep.subr.bf16.mxu0 %v4593_v42 }
  0x5e   :  { %3439 = vmatpush1.bf16.msra.mxu0 %v4617_v52 }
  0x5f   :  { %3441 = vmatprep.subr.bf16.mxu0 %v4629_v56 }
  0x62   :  { %3443 = vmatpush1.bf16.msra.mxu0 %v4653_v3 }
  0x63   :  { %3445 = vmatprep.subr.bf16.mxu0 %v4665_v8 }
  0x66   :  { %3447 = vmatpush1.bf16.msra.mxu0 %v4686_v17 }
  0x67   :  { %3449 = vmatprep.subr.bf16.mxu0 %v4692_v19 }
  0x6a   :  { %3451 = vmatpush1.bf16.msra.mxu0 %v4710_v26 }
  0x6b   :  { %3453 = vmatprep.subr.bf16.mxu0 %v4724_v35 }
  0x6e   :  { %3455 = vmatpush1.bf16.msra.mxu0 %v4745_v44 }
  0x6f   :  { %3457 = vmatprep.subr.bf16.mxu0 %v4761_v49 }
  0x72   :  { %3459 = vmatpush1.bf16.msra.mxu0 %v4778_v54 }
  0x73   :  { %3493 = vmatprep.subr.bf16.mxu0 %v4544_v27 }
  0xe8   :  { %v158_v38 = vpop.f32.mrb[0].mxu0 }
  0xe9   :  { %v160_v40 = vpop.f32.mrb[1].mxu0  ;;  %v4936_v0 = vadd.f32 %v158_v38, %v71_v60 }
  0xea   :  { %v4934_v63 = vadd.f32 %v160_v40, %v75_v59 }
  0xfd   :  { %v229_v41 = vpop.f32.mrb[0].mxu1 }
  0xfe   :  { %v231_v47 = vpop.f32.mrb[1].mxu1  ;;  %v4946_v23 = vadd.f32 %v229_v41, %v79_v14 }
  0xff   :  { %v4948_v25 = vadd.f32 %v231_v47, %v83_v16 }
 0x108   :  { %v364_v57 = vpop.f32.mrb[2].mxu0 }
 0x109   :  { %v366_v58 = vpop.f32.mrb[3].mxu0  ;;  %v440_v2 = vadd.f32 %v364_v57, %v4936_v0 }
 0x10a   :  { %v441_v1 = vadd.f32 %v366_v58, %v4934_v63 }
 0x10b   :  { %v3095_v9 = vmul.f32 -1.442695, %v440_v2 }
 0x10c   :  { %v3096_v6 = vmul.f32 -1.442695, %v441_v1 }
 0x10e   :  { %4283 = vpow2.f32 %v3096_v6 }
 0x10f   :  { %4285 = vpow2.f32 %v3095_v9 }
 0x118   :  { %v4284_v15 = vpop.eup %4283 }
 0x119   :  { %v4286_v18 = vpop.eup %4285  ;;  %v454_v22 = vadd.f32 1.0, %v4284_v15 }
 0x11a   :  { %v453_v24 = vadd.f32 1.0, %v4286_v18 }
 0x11b   :  { %4287 = vrcp.f32 %v454_v22 }
 0x11c   :  { %4289 = vrcp.f32 %v453_v24 }
 0x125   :  { %v4288_v57 = vpop.eup %4287 }
 0x126   :  { %v4290_v51 = vpop.eup %4289  ;;  %v463_v59 = vmul.f32 0.0, %v4288_v57 }
 0x128   :  { %v435_v31 = vpop.f32.mrb[4].mxu0 }
 0x129   :  { %v442_v36 = vadd.f32 %v435_v31, %v4946_v23  ;;  %v437_v38 = vpop.f32.mrb[5].mxu0 }
 0x12a   :  { %v443_v40 = vadd.f32 %v437_v38, %v4948_v25 }
 0x12b   :  { %4291 = vtanh.f32 %v442_v36 }
 0x12c   :  { %v3097_v45 = vmul.f32 -1.442695, %v443_v40 }
 0x12e   :  { %4293 = vpow2.f32 %v3097_v45 }
 0x135   :  { %v4292_v58 = vpop.eup %4291 }
 0x136   :  { %v464_v41 = vmul.f32 %v4292_v58, %v4290_v51 }
 0x138   :  { %v4294_v60 = vpop.eup %4293  ;;  %v4952_v1 = vadd.f32 %v464_v41, %v463_v59 }
 0x139   :  { %v455_v47 = vadd.f32 1.0, %v4294_v60 }
 0x13a   :  { %4295 = vtanh.f32 %v4952_v1 }
 0x13b   :  { %4297 = vrcp.f32 %v455_v47 }
 0x144   :  { %v4296_v2 = vpop.eup %4295 }
 0x145   :  { %v4298_v6 = vpop.eup %4297 }
 0x146   :  { %v467_v9 = vmul.f32 %v4298_v6, %v4296_v2 }
 0x148   :  { %468 = vst [vmem:[#allocation2] sm:$0x1] %v467_v9  ;;  %534 = vmatmul.mubr.f32.vlgmr.msra.gmra.mrb[6].mxu0 %v467_v9  ;;  %605 = vmatmul.mubr.f32.vlgmr.msra.gmra.mrb[2].mxu1 %v467_v9 }
 0x149   :  { %3495 = vmatpush1.bf16.msra.mxu0 %v4563_v33  ;;  %3527 = vmatpush1.bf16.msra.mxu1 %v4742_v43 }
 0x14a   :  { %3497 = vmatprep.subr.bf16.mxu0 %v4566_v34  ;;  %3529 = vmatprep.subr.bf16.mxu1 %v4750_v46 }
 0x14b   :  { %722 = vmatprep.mubr.f32.mxu0 %v4435_v7  ;;  %793 = vmatprep.mubr.f32.mxu1 %v4435_v7 }
 0x14d   :  { %3499 = vmatpush1.bf16.msra.mxu0 %v4583_v39  ;;  %3531 = vmatpush1.bf16.msra.mxu1 %v4775_v32 }
 0x14e   :  { %3501 = vmatprep.subr.bf16.mxu0 %v4593_v42  ;;  %3533 = vmatprep.subr.bf16.mxu1 %v4780_v55 }
 0x151   :  { %3503 = vmatpush1.bf16.msra.mxu0 %v4617_v52  ;;  %3535 = vmatpush1.bf16.msra.mxu1 %v4797_v61 }
 0x152   :  { %3505 = vmatprep.subr.bf16.mxu0 %v4629_v56  ;;  %3537 = vmatprep.subr.bf16.mxu1 %v4800_v62 }
 0x155   :  { %3507 = vmatpush1.bf16.msra.mxu0 %v4653_v3  ;;  %3539 = vmatpush1.bf16.msra.mxu1 %v4818_v4 }
 0x156   :  { %3509 = vmatprep.subr.bf16.mxu0 %v4665_v8  ;;  %3541 = vmatprep.subr.bf16.mxu1 %v4821_v5 }
 0x159   :  { %3511 = vmatpush1.bf16.msra.mxu0 %v4686_v17  ;;  %3543 = vmatpush1.bf16.msra.mxu1 %v4839_v12 }
 0x15a   :  { %3513 = vmatprep.subr.bf16.mxu0 %v4692_v19  ;;  %3545 = vmatprep.subr.bf16.mxu1 %v4842_v13 }
 0x15d   :  { %3515 = vmatpush1.bf16.msra.mxu0 %v4710_v26  ;;  %3547 = vmatpush1.bf16.msra.mxu1 %v4859_v20 }
 0x15e   :  { %3517 = vmatprep.subr.bf16.mxu0 %v4724_v35  ;;  %3549 = vmatprep.subr.bf16.mxu1 %v4862_v21 }
 0x161   :  { %3519 = vmatpush1.bf16.msra.mxu0 %v4745_v44  ;;  %3551 = vmatpush1.bf16.msra.mxu1 %v4879_v28 }
 0x162   :  { %3521 = vmatprep.subr.bf16.mxu0 %v4761_v49  ;;  %3553 = vmatprep.subr.bf16.mxu1 %v4882_v30 }
 0x165   :  { %3523 = vmatpush1.bf16.msra.mxu0 %v4778_v54  ;;  %3555 = vmatpush1.bf16.msra.mxu1 %v4893_v37 }
 0x166   :  { %3557 = vmatprep.subr.bf16.mxu0 %v4544_v27  ;;  %3589 = vmatprep.subr.bf16.mxu1 %v4715_v29 }
 0x21b   :  { %v535_v14 = vpop.f32.mrb[6].mxu0  ;;  %v606_v15 = vpop.f32.mrb[2].mxu1 }
 0x21c   :  { %v615_v16 = vrot.slane %v535_v14, 7  ;;  %v537_v18 = vpop.f32.mrb[7].mxu0  ;;  %v608_v22 = vpop.f32.mrb[3].mxu1  ;;  %v617_v51 = vrot.slane %v606_v15, 7 }
 0x21d   :  { %v616_v24 = vrot.slane %v537_v18, 7  ;;  %v618_v45 = vrot.slane %v608_v22, 7 }
 0x21e   :  { %v623_v31 = vadd.f32 %v615_v16, %v4936_v0  ;;  %v625_v59 = vadd.f32 %v617_v51, %v4946_v23  ;;  %v647_v16 = vrot.slane %v4952_v1, 7 }
 0x21f   :  { %v624_v36 = vadd.f32 %v616_v24, %v4934_v63  ;;  %v626_v57 = vadd.f32 %v618_v45, %v4948_v25 }
 0x220   :  { %v3098_v38 = vmul.f32 -1.442695, %v623_v31 }
 0x221   :  { %v3099_v40 = vmul.f32 -1.442695, %v624_v36  ;;  %v3100_v58 = vmul.f32 -1.442695, %v626_v57 }
 0x222   :  { %4299 = vpow2.f32 %v3098_v38 }
 0x223   :  { %4301 = vpow2.f32 %v3099_v40 }
 0x224   :  { %4303 = vpow2.f32 %v3100_v58 }
 0x225   :  { %4305 = vtanh.f32 %v625_v59 }
 0x22c   :  { %v4300_v41 = vpop.eup %4299 }
 0x22d   :  { %v4302_v60 = vpop.eup %4301  ;;  %v636_v47 = vadd.f32 1.0, %v4300_v41 }
 0x22e   :  { %v637_v2 = vadd.f32 1.0, %v4302_v60  ;;  %v4304_v6 = vpop.eup %4303 }
 0x22f   :  { %4307 = vrcp.f32 %v636_v47  ;;  %v4306_v9 = vpop.eup %4305  ;;  %v638_v24 = vadd.f32 1.0, %v4304_v6 }
 0x230   :  { %4309 = vrcp.f32 %v637_v2 }
 0x231   :  { %4311 = vrcp.f32 %v638_v24 }
 0x239   :  { %v4308_v14 = vpop.eup %4307 }
 0x23a   :  { %v4310_v18 = vpop.eup %4309  ;;  %v650_v22 = vmul.f32 %v4308_v14, %v4306_v9 }
 0x23b   :  { %v649_v15 = vmul.f32 %v4310_v18, %v647_v16  ;;  %v4312_v36 = vpop.eup %4311 }
 0x23d   :  { %v4994_v31 = vadd.f32 %v650_v22, %v649_v15 }
 0x23f   :  { %4313 = vtanh.f32 %v4994_v31 }
 0x249   :  { %v4314_v38 = vpop.eup %4313 }
 0x24a   :  { %v653_v40 = vmul.f32 %v4314_v38, %v4312_v36 }
 0x24c   :  { %654 = vst [vmem:[#allocation2] sm:$0x2] %v653_v40  ;;  %v656_v45 = vrot.slane %v653_v40, 1 }
 0x24e   :  { %723 = vmatmul.mubr.f32.vlgmr.msra.gmra.mrb[8].mxu0 %v656_v45  ;;  %794 = vmatmul.mubr.f32.vlgmr.msra.gmra.mrb[4].mxu1 %v656_v45 }
 0x24f   :  { %3559 = vmatpush1.bf16.msra.mxu0 %v4563_v33  ;;  %3591 = vmatpush1.bf16.msra.mxu1 %v4742_v43 }
 0x250   :  { %3561 = vmatprep.subr.bf16.mxu0 %v4566_v34  ;;  %3593 = vmatprep.subr.bf16.mxu1 %v4750_v46 }
 0x251   :  { %911 = vmatprep.mubr.f32.mxu0 %v4435_v7  ;;  %982 = vmatprep.mubr.f32.mxu1 %v4435_v7 }
 0x253   :  { %3563 = vmatpush1.bf16.msra.mxu0 %v4583_v39  ;;  %3595 = vmatpush1.bf16.msra.mxu1 %v4775_v32 }
 0x254   :  { %3565 = vmatprep.subr.bf16.mxu0 %v4593_v42  ;;  %3597 = vmatprep.subr.bf16.mxu1 %v4780_v55 }
 0x257   :  { %3567 = vmatpush1.bf16.msra.mxu0 %v4617_v52  ;;  %3599 = vmatpush1.bf16.msra.mxu1 %v4797_v61 }
 0x258   :  { %3569 = vmatprep.subr.bf16.mxu0 %v4629_v56  ;;  %3601 = vmatprep.subr.bf16.mxu1 %v4800_v62 }
 0x25b   :  { %3571 = vmatpush1.bf16.msra.mxu0 %v4653_v3  ;;  %3603 = vmatpush1.bf16.msra.mxu1 %v4818_v4 }
 0x25c   :  { %3573 = vmatprep.subr.bf16.mxu0 %v4665_v8  ;;  %3605 = vmatprep.subr.bf16.mxu1 %v4821_v5 }
 0x25f   :  { %3575 = vmatpush1.bf16.msra.mxu0 %v4686_v17  ;;  %3607 = vmatpush1.bf16.msra.mxu1 %v4839_v12 }
 0x260   :  { %3577 = vmatprep.subr.bf16.mxu0 %v4692_v19  ;;  %3609 = vmatprep.subr.bf16.mxu1 %v4842_v13 }
 0x263   :  { %3579 = vmatpush1.bf16.msra.mxu0 %v4710_v26  ;;  %3611 = vmatpush1.bf16.msra.mxu1 %v4859_v20 }
 0x264   :  { %3581 = vmatprep.subr.bf16.mxu0 %v4724_v35  ;;  %3613 = vmatprep.subr.bf16.mxu1 %v4862_v21 }
 0x267   :  { %3583 = vmatpush1.bf16.msra.mxu0 %v4745_v44  ;;  %3615 = vmatpush1.bf16.msra.mxu1 %v4879_v28 }
 0x268   :  { %3585 = vmatprep.subr.bf16.mxu0 %v4761_v49  ;;  %3617 = vmatprep.subr.bf16.mxu1 %v4882_v30 }
 0x26b   :  { %3587 = vmatpush1.bf16.msra.mxu0 %v4778_v54  ;;  %3619 = vmatpush1.bf16.msra.mxu1 %v4893_v37 }
 0x26c   :  { %3621 = vmatprep.subr.bf16.mxu0 %v4544_v27  ;;  %3653 = vmatprep.subr.bf16.mxu1 %v4715_v29 }
 0x321   :  { %v724_v1 = vpop.f32.mrb[8].mxu0  ;;  %v795_v57 = vpop.f32.mrb[4].mxu1 }
 0x322   :  { %v804_v51 = vrot.slane %v724_v1, 6  ;;  %v726_v58 = vpop.f32.mrb[9].mxu0  ;;  %v797_v59 = vpop.f32.mrb[5].mxu1  ;;  %v806_v16 = vrot.slane %v795_v57, 6 }
 0x323   :  { %v805_v41 = vrot.slane %v726_v58, 6  ;;  %v807_v9 = vrot.slane %v797_v59, 6 }
 0x324   :  { %v812_v60 = vadd.f32 %v804_v51, %v4936_v0  ;;  %v814_v22 = vadd.f32 %v806_v16, %v4946_v23  ;;  %v836_v51 = vrot.slane %v4994_v31, 7 }
 0x325   :  { %v813_v47 = vadd.f32 %v805_v41, %v4934_v63  ;;  %v815_v14 = vadd.f32 %v807_v9, %v4948_v25 }
 0x326   :  { %v3101_v2 = vmul.f32 -1.442695, %v812_v60 }
 0x327   :  { %v3102_v6 = vmul.f32 -1.442695, %v813_v47  ;;  %v3103_v18 = vmul.f32 -1.442695, %v815_v14 }
 0x328   :  { %4315 = vpow2.f32 %v3101_v2 }
 0x329   :  { %4317 = vpow2.f32 %v3102_v6 }
 0x32a   :  { %4319 = vpow2.f32 %v3103_v18 }
 0x32b   :  { %4321 = vtanh.f32 %v814_v22 }
 0x332   :  { %v4316_v24 = vpop.eup %4315 }
 0x333   :  { %v4318_v15 = vpop.eup %4317  ;;  %v825_v36 = vadd.f32 1.0, %v4316_v24 }
 0x334   :  { %v826_v38 = vadd.f32 1.0, %v4318_v15  ;;  %v4320_v40 = vpop.eup %4319 }
 0x335   :  { %4323 = vrcp.f32 %v825_v36  ;;  %v4322_v45 = vpop.eup %4321  ;;  %v827_v41 = vadd.f32 1.0, %v4320_v40 }
 0x336   :  { %4325 = vrcp.f32 %v826_v38 }
 0x337   :  { %4327 = vrcp.f32 %v827_v41 }
 0x33f   :  { %v4324_v1 = vpop.eup %4323 }
 0x340   :  { %v4326_v58 = vpop.eup %4325  ;;  %v839_v59 = vmul.f32 %v4324_v1, %v4322_v45 }
 0x341   :  { %v838_v57 = vmul.f32 %v4326_v58, %v836_v51  ;;  %v4328_v47 = vpop.eup %4327 }
 0x343   :  { %v5036_v60 = vadd.f32 %v839_v59, %v838_v57 }
 0x345   :  { %4329 = vtanh.f32 %v5036_v60 }
 0x34f   :  { %v4330_v2 = vpop.eup %4329 }
 0x350   :  { %v842_v6 = vmul.f32 %v4330_v2, %v4328_v47 }
 0x352   :  { %843 = vst [vmem:[#allocation2] sm:$0x4] %v842_v6  ;;  %v845_v9 = vrot.slane %v842_v6, 2 }
 0x354   :  { %912 = vmatmul.mubr.f32.vlgmr.msra.gmra.mrb[10].mxu0 %v845_v9  ;;  %983 = vmatmul.mubr.f32.vlgmr.msra.gmra.mrb[6].mxu1 %v845_v9 }
 0x355   :  { %3623 = vmatpush1.bf16.msra.mxu0 %v4563_v33  ;;  %3655 = vmatpush1.bf16.msra.mxu1 %v4742_v43 }
 0x356   :  { %3625 = vmatprep.subr.bf16.mxu0 %v4566_v34  ;;  %3657 = vmatprep.subr.bf16.mxu1 %v4750_v46 }
 0x357   :  { %1100 = vmatprep.mubr.f32.mxu0 %v4435_v7  ;;  %1171 = vmatprep.mubr.f32.mxu1 %v4435_v7 }
 0x359   :  { %3627 = vmatpush1.bf16.msra.mxu0 %v4583_v39  ;;  %3659 = vmatpush1.bf16.msra.mxu1 %v4775_v32 }
 0x35a   :  { %3629 = vmatprep.subr.bf16.mxu0 %v4593_v42  ;;  %3661 = vmatprep.subr.bf16.mxu1 %v4780_v55 }
 0x35d   :  { %3631 = vmatpush1.bf16.msra.mxu0 %v4617_v52  ;;  %3663 = vmatpush1.bf16.msra.mxu1 %v4797_v61 }
 0x35e   :  { %3633 = vmatprep.subr.bf16.mxu0 %v4629_v56  ;;  %3665 = vmatprep.subr.bf16.mxu1 %v4800_v62 }
 0x361   :  { %3635 = vmatpush1.bf16.msra.mxu0 %v4653_v3  ;;  %3667 = vmatpush1.bf16.msra.mxu1 %v4818_v4 }
 0x362   :  { %3637 = vmatprep.subr.bf16.mxu0 %v4665_v8  ;;  %3669 = vmatprep.subr.bf16.mxu1 %v4821_v5 }
 0x365   :  { %3639 = vmatpush1.bf16.msra.mxu0 %v4686_v17  ;;  %3671 = vmatpush1.bf16.msra.mxu1 %v4839_v12 }
 0x366   :  { %3641 = vmatprep.subr.bf16.mxu0 %v4692_v19  ;;  %3673 = vmatprep.subr.bf16.mxu1 %v4842_v13 }
 0x369   :  { %3643 = vmatpush1.bf16.msra.mxu0 %v4710_v26  ;;  %3675 = vmatpush1.bf16.msra.mxu1 %v4859_v20 }
 0x36a   :  { %3645 = vmatprep.subr.bf16.mxu0 %v4724_v35  ;;  %3677 = vmatprep.subr.bf16.mxu1 %v4862_v21 }
 0x36d   :  { %3647 = vmatpush1.bf16.msra.mxu0 %v4745_v44  ;;  %3679 = vmatpush1.bf16.msra.mxu1 %v4879_v28 }
 0x36e   :  { %3649 = vmatprep.subr.bf16.mxu0 %v4761_v49  ;;  %3681 = vmatprep.subr.bf16.mxu1 %v4882_v30 }
 0x371   :  { %3651 = vmatpush1.bf16.msra.mxu0 %v4778_v54  ;;  %3683 = vmatpush1.bf16.msra.mxu1 %v4893_v37 }
 0x372   :  { %3685 = vmatprep.subr.bf16.mxu0 %v4544_v27  ;;  %3717 = vmatprep.subr.bf16.mxu1 %v4715_v29 }
 0x427   :  { %v913_v31 = vpop.f32.mrb[10].mxu0  ;;  %v984_v14 = vpop.f32.mrb[6].mxu1 }
 0x428   :  { %v993_v16 = vrot.slane %v913_v31, 5  ;;  %v915_v18 = vpop.f32.mrb[11].mxu0  ;;  %v986_v22 = vpop.f32.mrb[7].mxu1  ;;  %v995_v51 = vrot.slane %v984_v14, 5 }
 0x429   :  { %v994_v24 = vrot.slane %v915_v18, 5  ;;  %v996_v45 = vrot.slane %v986_v22, 5 }
 0x42a   :  { %v1001_v15 = vadd.f32 %v993_v16, %v4936_v0  ;;  %v1003_v59 = vadd.f32 %v995_v51, %v4946_v23  ;;  %v1025_v16 = vrot.slane %v5036_v60, 7 }
 0x42b   :  { %v1002_v36 = vadd.f32 %v994_v24, %v4934_v63  ;;  %v1004_v1 = vadd.f32 %v996_v45, %v4948_v25 }
 0x42c   :  { %v3104_v38 = vmul.f32 -1.442695, %v1001_v15 }
 0x42d   :  { %v3105_v40 = vmul.f32 -1.442695, %v1002_v36  ;;  %v3106_v58 = vmul.f32 -1.442695, %v1004_v1 }
 0x42e   :  { %4331 = vpow2.f32 %v3104_v38 }
 0x42f   :  { %4333 = vpow2.f32 %v3105_v40 }
 0x430   :  { %4335 = vpow2.f32 %v3106_v58 }
 0x431   :  { %4337 = vtanh.f32 %v1003_v59 }
 0x438   :  { %v4332_v41 = vpop.eup %4331 }
 0x439   :  { %v4334_v57 = vpop.eup %4333  ;;  %v1014_v47 = vadd.f32 1.0, %v4332_v41 }
 0x43a   :  { %v1015_v2 = vadd.f32 1.0, %v4334_v57  ;;  %v4336_v6 = vpop.eup %4335 }
 0x43b   :  { %4339 = vrcp.f32 %v1014_v47  ;;  %v4338_v9 = vpop.eup %4337  ;;  %v1016_v24 = vadd.f32 1.0, %v4336_v6 }
 0x43c   :  { %4341 = vrcp.f32 %v1015_v2 }
 0x43d   :  { %4343 = vrcp.f32 %v1016_v24 }
 0x445   :  { %v4340_v31 = vpop.eup %4339 }
 0x446   :  { %v4342_v18 = vpop.eup %4341  ;;  %v1028_v22 = vmul.f32 %v4340_v31, %v4338_v9 }
 0x447   :  { %v1027_v14 = vmul.f32 %v4342_v18, %v1025_v16  ;;  %v4344_v36 = vpop.eup %4343 }
 0x449   :  { %v5078_v15 = vadd.f32 %v1028_v22, %v1027_v14 }
 0x44b   :  { %4345 = vtanh.f32 %v5078_v15 }
 0x455   :  { %v4346_v38 = vpop.eup %4345 }
 0x456   :  { %v1031_v40 = vmul.f32 %v4346_v38, %v4344_v36 }
 0x458   :  { %1032 = vst [vmem:[#allocation2] sm:$0x8] %v1031_v40  ;;  %v1034_v45 = vrot.slane %v1031_v40, 3 }
 0x45a   :  { %1101 = vmatmul.mubr.f32.vlgmr.msra.gmra.mrb[12].mxu0 %v1034_v45  ;;  %1172 = vmatmul.mubr.f32.vlgmr.msra.gmra.mrb[8].mxu1 %v1034_v45 }
 0x45b   :  { %3687 = vmatpush1.bf16.msra.mxu0 %v4563_v33  ;;  %3719 = vmatpush1.bf16.msra.mxu1 %v4742_v43 }
 0x45c   :  { %3689 = vmatprep.subr.bf16.mxu0 %v4566_v34  ;;  %3721 = vmatprep.subr.bf16.mxu1 %v4750_v46 }
 0x45d   :  { %1289 = vmatprep.mubr.f32.mxu0 %v4435_v7  ;;  %1360 = vmatprep.mubr.f32.mxu1 %v4435_v7 }
 0x45f   :  { %3691 = vmatpush1.bf16.msra.mxu0 %v4583_v39  ;;  %3723 = vmatpush1.bf16.msra.mxu1 %v4775_v32 }
 0x460   :  { %3693 = vmatprep.subr.bf16.mxu0 %v4593_v42  ;;  %3725 = vmatprep.subr.bf16.mxu1 %v4780_v55 }
 0x463   :  { %3695 = vmatpush1.bf16.msra.mxu0 %v4617_v52  ;;  %3727 = vmatpush1.bf16.msra.mxu1 %v4797_v61 }
 0x464   :  { %3697 = vmatprep.subr.bf16.mxu0 %v4629_v56  ;;  %3729 = vmatprep.subr.bf16.mxu1 %v4800_v62 }
 0x467   :  { %3699 = vmatpush1.bf16.msra.mxu0 %v4653_v3  ;;  %3731 = vmatpush1.bf16.msra.mxu1 %v4818_v4 }
 0x468   :  { %3701 = vmatprep.subr.bf16.mxu0 %v4665_v8  ;;  %3733 = vmatprep.subr.bf16.mxu1 %v4821_v5 }
 0x46b   :  { %3703 = vmatpush1.bf16.msra.mxu0 %v4686_v17  ;;  %3735 = vmatpush1.bf16.msra.mxu1 %v4839_v12 }
 0x46c   :  { %3705 = vmatprep.subr.bf16.mxu0 %v4692_v19  ;;  %3737 = vmatprep.subr.bf16.mxu1 %v4842_v13 }
 0x46f   :  { %3707 = vmatpush1.bf16.msra.mxu0 %v4710_v26  ;;  %3739 = vmatpush1.bf16.msra.mxu1 %v4859_v20 }
 0x470   :  { %3709 = vmatprep.subr.bf16.mxu0 %v4724_v35  ;;  %3741 = vmatprep.subr.bf16.mxu1 %v4862_v21 }
 0x473   :  { %3711 = vmatpush1.bf16.msra.mxu0 %v4745_v44  ;;  %3743 = vmatpush1.bf16.msra.mxu1 %v4879_v28 }
 0x474   :  { %3713 = vmatprep.subr.bf16.mxu0 %v4761_v49  ;;  %3745 = vmatprep.subr.bf16.mxu1 %v4882_v30 }
 0x477   :  { %3715 = vmatpush1.bf16.msra.mxu0 %v4778_v54  ;;  %3747 = vmatpush1.bf16.msra.mxu1 %v4893_v37 }
 0x478   :  { %3749 = vmatprep.subr.bf16.mxu0 %v4544_v27  ;;  %3781 = vmatprep.subr.bf16.mxu1 %v4715_v29 }
 0x52d   :  { %v1102_v60 = vpop.f32.mrb[12].mxu0  ;;  %v1173_v1 = vpop.f32.mrb[8].mxu1 }
 0x52e   :  { %v1182_v51 = vrot.slane %v1102_v60, 4  ;;  %v1104_v58 = vpop.f32.mrb[13].mxu0  ;;  %v1175_v59 = vpop.f32.mrb[9].mxu1  ;;  %v1184_v16 = vrot.slane %v1173_v1, 4 }
 0x52f   :  { %v1183_v41 = vrot.slane %v1104_v58, 4  ;;  %v1185_v9 = vrot.slane %v1175_v59, 4 }
 0x530   :  { %v1190_v57 = vadd.f32 %v1182_v51, %v4936_v0  ;;  %v1192_v22 = vadd.f32 %v1184_v16, %v4946_v23  ;;  %v1214_v51 = vrot.slane %v5078_v15, 7 }
 0x531   :  { %v1191_v47 = vadd.f32 %v1183_v41, %v4934_v63  ;;  %v1193_v31 = vadd.f32 %v1185_v9, %v4948_v25 }
 0x532   :  { %v3107_v2 = vmul.f32 -1.442695, %v1190_v57 }
 0x533   :  { %v3108_v6 = vmul.f32 -1.442695, %v1191_v47  ;;  %v3109_v18 = vmul.f32 -1.442695, %v1193_v31 }
 0x534   :  { %4347 = vpow2.f32 %v3107_v2 }
 0x535   :  { %4349 = vpow2.f32 %v3108_v6 }
 0x536   :  { %4351 = vpow2.f32 %v3109_v18 }
 0x537   :  { %4353 = vtanh.f32 %v1192_v22 }
 0x53e   :  { %v4348_v24 = vpop.eup %4347 }
 0x53f   :  { %v4350_v14 = vpop.eup %4349  ;;  %v1203_v36 = vadd.f32 1.0, %v4348_v24 }
 0x540   :  { %v1204_v38 = vadd.f32 1.0, %v4350_v14  ;;  %v4352_v40 = vpop.eup %4351 }
 0x541   :  { %4355 = vrcp.f32 %v1203_v36  ;;  %v4354_v45 = vpop.eup %4353  ;;  %v1205_v41 = vadd.f32 1.0, %v4352_v40 }
 0x542   :  { %4357 = vrcp.f32 %v1204_v38 }
 0x543   :  { %4359 = vrcp.f32 %v1205_v41 }
 0x54b   :  { %v4356_v60 = vpop.eup %4355 }
 0x54c   :  { %v4358_v58 = vpop.eup %4357  ;;  %v1217_v59 = vmul.f32 %v4356_v60, %v4354_v45 }
 0x54d   :  { %v1216_v1 = vmul.f32 %v4358_v58, %v1214_v51  ;;  %v4360_v47 = vpop.eup %4359 }
 0x54f   :  { %v5120_v57 = vadd.f32 %v1217_v59, %v1216_v1 }
 0x551   :  { %4361 = vtanh.f32 %v5120_v57 }
 0x55b   :  { %v4362_v2 = vpop.eup %4361 }
 0x55c   :  { %v1220_v6 = vmul.f32 %v4362_v2, %v4360_v47 }
 0x55e   :  { %1221 = vst [vmem:[#allocation2] sm:$0x10] %v1220_v6  ;;  %v1223_v9 = vrot.slane %v1220_v6, 4 }
 0x560   :  { %1290 = vmatmul.mubr.f32.vlgmr.msra.gmra.mrb[14].mxu0 %v1223_v9  ;;  %1361 = vmatmul.mubr.f32.vlgmr.msra.gmra.mrb[10].mxu1 %v1223_v9  ;;  %v1403_v9 = vrot.slane %v5120_v57, 7 }
 0x561   :  { %3751 = vmatpush1.bf16.msra.mxu0 %v4563_v33  ;;  %3783 = vmatpush1.bf16.msra.mxu1 %v4742_v43 }
 0x562   :  { %3753 = vmatprep.subr.bf16.mxu0 %v4566_v34  ;;  %3785 = vmatprep.subr.bf16.mxu1 %v4750_v46 }
 0x563   :  { %1478 = vmatprep.mubr.f32.mxu0 %v4435_v7  ;;  %1549 = vmatprep.mubr.f32.mxu1 %v4435_v7 }
 0x565   :  { %3755 = vmatpush1.bf16.msra.mxu0 %v4583_v39  ;;  %3787 = vmatpush1.bf16.msra.mxu1 %v4775_v32 }
 0x566   :  { %3757 = vmatprep.subr.bf16.mxu0 %v4593_v42  ;;  %3789 = vmatprep.subr.bf16.mxu1 %v4780_v55 }
 0x569   :  { %3759 = vmatpush1.bf16.msra.mxu0 %v4617_v52  ;;  %3791 = vmatpush1.bf16.msra.mxu1 %v4797_v61 }
 0x56a   :  { %3761 = vmatprep.subr.bf16.mxu0 %v4629_v56  ;;  %3793 = vmatprep.subr.bf16.mxu1 %v4800_v62 }
 0x56d   :  { %3763 = vmatpush1.bf16.msra.mxu0 %v4653_v3  ;;  %3795 = vmatpush1.bf16.msra.mxu1 %v4818_v4 }
 0x56e   :  { %3765 = vmatprep.subr.bf16.mxu0 %v4665_v8  ;;  %3797 = vmatprep.subr.bf16.mxu1 %v4821_v5 }
 0x571   :  { %3767 = vmatpush1.bf16.msra.mxu0 %v4686_v17  ;;  %3799 = vmatpush1.bf16.msra.mxu1 %v4839_v12 }
 0x572   :  { %3769 = vmatprep.subr.bf16.mxu0 %v4692_v19  ;;  %3801 = vmatprep.subr.bf16.mxu1 %v4842_v13 }
 0x575   :  { %3771 = vmatpush1.bf16.msra.mxu0 %v4710_v26  ;;  %3803 = vmatpush1.bf16.msra.mxu1 %v4859_v20 }
 0x576   :  { %3773 = vmatprep.subr.bf16.mxu0 %v4724_v35  ;;  %3805 = vmatprep.subr.bf16.mxu1 %v4862_v21 }
 0x579   :  { %3775 = vmatpush1.bf16.msra.mxu0 %v4745_v44  ;;  %3807 = vmatpush1.bf16.msra.mxu1 %v4879_v28 }
 0x57a   :  { %3777 = vmatprep.subr.bf16.mxu0 %v4761_v49  ;;  %3809 = vmatprep.subr.bf16.mxu1 %v4882_v30 }
 0x57d   :  { %3779 = vmatpush1.bf16.msra.mxu0 %v4778_v54  ;;  %3811 = vmatpush1.bf16.msra.mxu1 %v4893_v37 }
 0x57e   :  { %3813 = vmatprep.subr.bf16.mxu0 %v4544_v27  ;;  %3845 = vmatprep.subr.bf16.mxu1 %v4715_v29 }
 0x633   :  { %v1291_v15 = vpop.f32.mrb[14].mxu0  ;;  %v1362_v31 = vpop.f32.mrb[10].mxu1 }
 0x634   :  { %v1371_v16 = vrot.slane %v1291_v15, 3  ;;  %v1293_v18 = vpop.f32.mrb[15].mxu0  ;;  %v1364_v22 = vpop.f32.mrb[11].mxu1  ;;  %v1373_v27 = vrot.slane %v1362_v31, 3 }
 0x635   :  { %v1372_v24 = vrot.slane %v1293_v18, 3  ;;  %v1374_v45 = vrot.slane %v1364_v22, 3 }
 0x636   :  { %v1379_v14 = vadd.f32 %v1371_v16, %v4936_v0  ;;  %v1381_v29 = vadd.f32 %v1373_v27, %v4946_v23  ;;  %v1793_v27 = vld [vmem:[%s6458_s5 + $0x18] sm:$0xff] }
 0x637   :  { %v1380_v36 = vadd.f32 %v1372_v24, %v4934_v63  ;;  %v1382_v60 = vadd.f32 %v1374_v45, %v4948_v25  ;;  %v1791_v45 = vld [vmem:[%s6458_s5 + $0x8] sm:$0xff] }
 0x638   :  { %v3110_v38 = vmul.f32 -1.442695, %v1379_v14 }
 0x639   :  { %v3111_v40 = vmul.f32 -1.442695, %v1380_v36  ;;  %v3112_v51 = vmul.f32 -1.442695, %v1382_v60  ;;  %v1799_v60 = vld [vmem:[%s6458_s5 + $0x48] sm:$0xff] }
 0x63a   :  { %4363 = vpow2.f32 %v3110_v38 }
 0x63b   :  { %4365 = vpow2.f32 %v3111_v40 }
 0x63c   :  { %4367 = vpow2.f32 %v3112_v51  ;;  %v3876_v51 = vpack.c.bf16 %v1799_v60, %v1791_v45  ;;  %v1854_v45 = vld [vmem:[%s6458_s5 + $0x200] sm:$0xff] }
 0x63d   :  { %4369 = vtanh.f32 %v1381_v29  ;;  %v1801_v29 = vld [vmem:[%s6458_s5 + $0x58] sm:$0xff]  ;;  %v1862_v60 = vld [vmem:[%s6458_s5 + $0x240] sm:$0xff] }
 0x644   :  { %v4364_v58 = vpop.eup %4363 }
 0x645   :  { %v4366_v59 = vpop.eup %4365  ;;  %v1392_v41 = vadd.f32 1.0, %v4364_v58  ;;  %v1790_v58 = vld [vmem:[%s6458_s5] sm:$0xff] }
 0x646   :  { %v1393_v1 = vadd.f32 1.0, %v4366_v59  ;;  %v4368_v47 = vpop.eup %4367  ;;  %v1798_v59 = vld [vmem:[%s6458_s5 + $0x40] sm:$0xff] }
 0x647   :  { %4371 = vrcp.f32 %v1392_v41  ;;  %v4370_v2 = vpop.eup %4369  ;;  %v1394_v18 = vadd.f32 1.0, %v4368_v47  ;;  %v3908_v41 = vpack.c.bf16 %v1801_v29, %v1793_v27  ;;  %v1792_v47 = vld [vmem:[%s6458_s5 + $0x10] sm:$0xff] }
 0x648   :  { %4373 = vrcp.f32 %v1393_v1  ;;  %v3878_v1 = vpack.c.bf16 %v1798_v59, %v1790_v58  ;;  %v1856_v29 = vld [vmem:[%s6458_s5 + $0x210] sm:$0xff] }
 0x649   :  { %4375 = vrcp.f32 %v1394_v18  ;;  %v1864_v58 = vld [vmem:[%s6458_s5 + $0x250] sm:$0xff] }
 0x64a   :  { %v3926_v59 = vpack.c.bf16 %v1864_v58, %v1856_v29 }
 0x651   :  { %v4372_v6 = vpop.eup %4371 }
 0x652   :  { %v4374_v15 = vpop.eup %4373  ;;  %v1406_v16 = vmul.f32 %v4372_v6, %v4370_v2  ;;  %v1800_v2 = vld [vmem:[%s6458_s5 + $0x50] sm:$0xff] }
 0x653   :  { %v1405_v31 = vmul.f32 %v4374_v15, %v1403_v9  ;;  %v4376_v24 = vpop.eup %4375  ;;  %v3910_v6 = vpack.c.bf16 %v1800_v2, %v1792_v47  ;;  %v1807_v9 = vld [vmem:[%s6458_s5 + $0x88] sm:$0xff]  ;;  %v1873_v47 = vld [vmem:[%s6458_s5 + $0x298] sm:$0xff] }
 0x654   :  { %v1815_v15 = vld [vmem:[%s6458_s5 + $0xc8] sm:$0xff] }
 0x655   :  { %v5162_v22 = vadd.f32 %v1406_v16, %v1405_v31  ;;  %v1809_v16 = vld [vmem:[%s6458_s5 + $0x98] sm:$0xff]  ;;  %v3880_v18 = vpack.c.bf16 %v1815_v15, %v1807_v9  ;;  %v1870_v9 = vld [vmem:[%s6458_s5 + $0x280] sm:$0xff] }
 0x656   :  { %v1817_v31 = vld [vmem:[%s6458_s5 + $0xd8] sm:$0xff]  ;;  %v1878_v15 = vld [vmem:[%s6458_s5 + $0x2c0] sm:$0xff] }
 0x657   :  { %4377 = vtanh.f32 %v5162_v22 }
 0x661   :  { %v4378_v14 = vpop.eup %4377 }
 0x662   :  { %v1409_v36 = vmul.f32 %v4378_v14, %v4376_v24  ;;  %v1814_v24 = vld [vmem:[%s6458_s5 + $0xc0] sm:$0xff]  ;;  %v3912_v14 = vpack.c.bf16 %v1817_v31, %v1809_v16  ;;  %v1872_v31 = vld [vmem:[%s6458_s5 + $0x290] sm:$0xff] }
 0x664   :  { %1410 = vst [vmem:[#allocation2] sm:$0x20] %v1409_v36  ;;  %v1412_v38 = vrot.slane %v1409_v36, 5 }
 0x666   :  { %1479 = vmatmul.mubr.f32.vlgmr.msra.gmra.mrb[16].mxu0 %v1412_v38  ;;  %1550 = vmatmul.mubr.f32.vlgmr.msra.gmra.mrb[12].mxu1 %v1412_v38  ;;  %v1808_v38 = vld [vmem:[%s6458_s5 + $0x90] sm:$0xff] }
 0x667   :  { %3815 = vmatpush1.bf16.msra.mxu0 %v4563_v33  ;;  %3847 = vmatpush1.bf16.msra.mxu1 %v4742_v43 }
 0x668   :  { %3817 = vmatprep.subr.bf16.mxu0 %v4566_v34  ;;  %3849 = vmatprep.subr.bf16.mxu1 %v4750_v46 }
 0x669   :  { %1667 = vmatprep.mubr.f32.mxu0 %v4435_v7  ;;  %1738 = vmatprep.mubr.f32.mxu1 %v4435_v7 }
 0x66b   :  { %3819 = vmatpush1.bf16.msra.mxu0 %v4583_v39  ;;  %3851 = vmatpush1.bf16.msra.mxu1 %v4775_v32 }
 0x66c   :  { %3821 = vmatprep.subr.bf16.mxu0 %v4593_v42  ;;  %3853 = vmatprep.subr.bf16.mxu1 %v4780_v55 }
 0x66f   :  { %3823 = vmatpush1.bf16.msra.mxu0 %v4617_v52  ;;  %3855 = vmatpush1.bf16.msra.mxu1 %v4797_v61 }
 0x670   :  { %3825 = vmatprep.subr.bf16.mxu0 %v4629_v56  ;;  %3857 = vmatprep.subr.bf16.mxu1 %v4800_v62 }
 0x673   :  { %3827 = vmatpush1.bf16.msra.mxu0 %v4653_v3  ;;  %3859 = vmatpush1.bf16.msra.mxu1 %v4818_v4 }
 0x674   :  { %3829 = vmatprep.subr.bf16.mxu0 %v4665_v8  ;;  %3861 = vmatprep.subr.bf16.mxu1 %v4821_v5  ;;  %v1592_v5 = vrot.slane %v5162_v22, 7  ;;  %v1806_v22 = vld [vmem:[%s6458_s5 + $0x80] sm:$0xff] }
 0x675   :  { %v3882_v36 = vpack.c.bf16 %v1814_v24, %v1806_v22  ;;  %v1880_v22 = vld [vmem:[%s6458_s5 + $0x2d0] sm:$0xff] }
 0x676   :  { %v3930_v24 = vpack.c.bf16 %v1880_v22, %v1872_v31 }
 0x677   :  { %3831 = vmatpush1.bf16.msra.mxu0 %v4686_v17  ;;  %3863 = vmatpush1.bf16.msra.mxu1 %v4839_v12 }
 0x678   :  { %3833 = vmatprep.subr.bf16.mxu0 %v4692_v19  ;;  %3865 = vmatprep.subr.bf16.mxu1 %v4842_v13 }
 0x67b   :  { %3835 = vmatpush1.bf16.msra.mxu0 %v4710_v26  ;;  %3867 = vmatpush1.bf16.msra.mxu1 %v4859_v20 }
 0x67c   :  { %3837 = vmatprep.subr.bf16.mxu0 %v4724_v35  ;;  %3869 = vmatprep.subr.bf16.mxu1 %v4862_v21 }
 0x67f   :  { %3839 = vmatpush1.bf16.msra.mxu0 %v4745_v44  ;;  %3871 = vmatpush1.bf16.msra.mxu1 %v4879_v28 }
 0x680   :  { %3841 = vmatprep.subr.bf16.mxu0 %v4761_v49  ;;  %3873 = vmatprep.subr.bf16.mxu1 %v4882_v30 }
 0x683   :  { %3843 = vmatpush1.bf16.msra.mxu0 %v4778_v54  ;;  %3875 = vmatpush1.bf16.msra.mxu1 %v4893_v37 }
 0x684   :  { %3877 = vmatprep.subr.bf16.mxu0 %v3876_v51  ;;  %3909 = vmatprep.subr.bf16.mxu1 %v3908_v41  ;;  %v3894_v51 = vpack.c.bf16 %v1862_v60, %v1854_v45  ;;  %v1871_v41 = vld [vmem:[%s6458_s5 + $0x288] sm:$0xff] }
 0x739   :  { %v1480_v33 = vpop.f32.mrb[16].mxu0  ;;  %v1551_v34 = vpop.f32.mrb[12].mxu1 }
 0x73a   :  { %v1560_v39 = vrot.slane %v1480_v33, 2  ;;  %v1482_v42 = vpop.f32.mrb[17].mxu0  ;;  %v1553_v52 = vpop.f32.mrb[13].mxu1  ;;  %v1562_v43 = vrot.slane %v1551_v34, 2  ;;  %v1816_v33 = vld [vmem:[%s6458_s5 + $0xd0] sm:$0xff] }
 0x73b   :  { %v1561_v56 = vrot.slane %v1482_v42, 2  ;;  %v1563_v26 = vrot.slane %v1553_v52, 2  ;;  %v3914_v34 = vpack.c.bf16 %v1816_v33, %v1808_v38  ;;  %v1831_v42 = vld [vmem:[%s6458_s5 + $0x148] sm:$0xff]  ;;  %v1825_v52 = vld [vmem:[%s6458_s5 + $0x118] sm:$0xff] }
 0x73c   :  { %v1568_v3 = vadd.f32 %v1560_v39, %v4936_v0  ;;  %v1570_v46 = vadd.f32 %v1562_v43, %v4946_v23  ;;  %v1823_v39 = vld [vmem:[%s6458_s5 + $0x108] sm:$0xff]  ;;  %v1832_v43 = vld [vmem:[%s6458_s5 + $0x150] sm:$0xff]  ;;  %v1889_v38 = vld [vmem:[%s6458_s5 + $0x318] sm:$0xff] }
 0x73d   :  { %v1569_v8 = vadd.f32 %v1561_v56, %v4934_v63  ;;  %v1571_v35 = vadd.f32 %v1563_v26, %v4948_v25  ;;  %v3884_v56 = vpack.c.bf16 %v1831_v42, %v1823_v39  ;;  %v1886_v39 = vld [vmem:[%s6458_s5 + $0x300] sm:$0xff] }
 0x73e   :  { %v3113_v17 = vmul.f32 -1.442695, %v1568_v3  ;;  %v1833_v3 = vld [vmem:[%s6458_s5 + $0x158] sm:$0xff]  ;;  %v1894_v42 = vld [vmem:[%s6458_s5 + $0x340] sm:$0xff] }
 0x73f   :  { %v3114_v19 = vmul.f32 -1.442695, %v1569_v8  ;;  %v3115_v44 = vmul.f32 -1.442695, %v1571_v35  ;;  %v1822_v8 = vld [vmem:[%s6458_s5 + $0x100] sm:$0xff]  ;;  %v1824_v35 = vld [vmem:[%s6458_s5 + $0x110] sm:$0xff] }
 0x740   :  { %4379 = vpow2.f32 %v3113_v17  ;;  %v1830_v17 = vld [vmem:[%s6458_s5 + $0x140] sm:$0xff] }
 0x741   :  { %4381 = vpow2.f32 %v3114_v19  ;;  %v3916_v19 = vpack.c.bf16 %v1833_v3, %v1825_v52  ;;  %v3886_v26 = vpack.c.bf16 %v1830_v17, %v1822_v8  ;;  %v1888_v3 = vld [vmem:[%s6458_s5 + $0x310] sm:$0xff] }
 0x742   :  { %4383 = vpow2.f32 %v3115_v44  ;;  %v3918_v44 = vpack.c.bf16 %v1832_v43, %v1824_v35  ;;  %v1896_v8 = vld [vmem:[%s6458_s5 + $0x350] sm:$0xff]  ;;  %v1905_v35 = vld [vmem:[%s6458_s5 + $0x398] sm:$0xff] }
 0x743   :  { %4385 = vtanh.f32 %v1570_v46  ;;  %v1839_v46 = vld [vmem:[%s6458_s5 + $0x188] sm:$0xff]  ;;  %v3934_v17 = vpack.c.bf16 %v1896_v8, %v1888_v3  ;;  %v1813_v3 = vld [vmem:[%s6458_s5 + $0xb8] sm:$0xff] }
 0x744   :  { %v1821_v8 = vld [vmem:[%s6458_s5 + $0xf8] sm:$0xff] }
 0x74a   :  { %v4380_v49 = vpop.eup %4379 }
 0x74b   :  { %v4382_v32 = vpop.eup %4381  ;;  %v1581_v54 = vadd.f32 1.0, %v4380_v49  ;;  %v1847_v49 = vld [vmem:[%s6458_s5 + $0x1c8] sm:$0xff] }
 0x74c   :  { %v1582_v55 = vadd.f32 1.0, %v4382_v32  ;;  %v4384_v61 = vpop.eup %4383  ;;  %v1841_v32 = vld [vmem:[%s6458_s5 + $0x198] sm:$0xff] }
 0x74d   :  { %4387 = vrcp.f32 %v1581_v54  ;;  %v4386_v62 = vpop.eup %4385  ;;  %v1583_v20 = vadd.f32 1.0, %v4384_v61  ;;  %v3888_v54 = vpack.c.bf16 %v1847_v49, %v1839_v46  ;;  %v1838_v61 = vld [vmem:[%s6458_s5 + $0x180] sm:$0xff] }
 0x74e   :  { %4389 = vrcp.f32 %v1582_v55  ;;  %v1849_v55 = vld [vmem:[%s6458_s5 + $0x1d8] sm:$0xff]  ;;  %v1902_v46 = vld [vmem:[%s6458_s5 + $0x380] sm:$0xff] }
 0x74f   :  { %4391 = vrcp.f32 %v1583_v20  ;;  %v1910_v49 = vld [vmem:[%s6458_s5 + $0x3c0] sm:$0xff] }
 0x757   :  { %v4388_v4 = vpop.eup %4387 }
 0x758   :  { %v4390_v12 = vpop.eup %4389  ;;  %v1595_v13 = vmul.f32 %v4388_v4, %v4386_v62  ;;  %v1846_v62 = vld [vmem:[%s6458_s5 + $0x1c0] sm:$0xff]  ;;  %v3920_v4 = vpack.c.bf16 %v1849_v55, %v1841_v32  ;;  %v1904_v55 = vld [vmem:[%s6458_s5 + $0x390] sm:$0xff] }
 0x759   :  { %v1594_v21 = vmul.f32 %v4390_v12, %v1592_v5  ;;  %v4392_v30 = vpop.eup %4391  ;;  %v3890_v5 = vpack.c.bf16 %v1846_v62, %v1838_v61  ;;  %v1840_v12 = vld [vmem:[%s6458_s5 + $0x190] sm:$0xff]  ;;  %v1795_v62 = vld [vmem:[%s6458_s5 + $0x28] sm:$0xff] }
 0x75a   :  { %v1912_v61 = vld [vmem:[%s6458_s5 + $0x3d0] sm:$0xff] }
 0x75b   :  { %v5202_v28 = vadd.f32 %v1595_v13, %v1594_v21  ;;  %v1848_v13 = vld [vmem:[%s6458_s5 + $0x1d0] sm:$0xff]  ;;  %v1855_v21 = vld [vmem:[%s6458_s5 + $0x208] sm:$0xff] }
 0x75c   :  { %v3922_v20 = vpack.c.bf16 %v1848_v13, %v1840_v12  ;;  %v1797_v12 = vld [vmem:[%s6458_s5 + $0x38] sm:$0xff] }
 0x75d   :  { %4393 = vtanh.f32 %v5202_v28  ;;  %v1805_v13 = vld [vmem:[%s6458_s5 + $0x78] sm:$0xff]  ;;  %v1781_v31 = vrot.slane %v5202_v28, 7  ;;  %v1796_v28 = vld [vmem:[%s6458_s5 + $0x30] sm:$0xff] }
 0x767   :  { %v4394_v37 = vpop.eup %4393 }
 0x768   :  { %v1598_v57 = vmul.f32 %v4394_v37, %v4392_v30  ;;  %v1863_v30 = vld [vmem:[%s6458_s5 + $0x248] sm:$0xff]  ;;  %v1857_v37 = vld [vmem:[%s6458_s5 + $0x218] sm:$0xff] }
 0x76a   :  { %1599 = vst [vmem:[#allocation2] sm:$0x40] %v1598_v57  ;;  %v1601_v40 = vrot.slane %v1598_v57, 6  ;;  %v3892_v57 = vpack.c.bf16 %v1863_v30, %v1855_v21  ;;  %v3972_v21 = vpack.c.bf16 %v1805_v13, %v1797_v12  ;;  %v1826_v12 = vld [vmem:[%s6458_s5 + $0x120] sm:$0xff] }
 0x76b   :  { %v1834_v13 = vld [vmem:[%s6458_s5 + $0x160] sm:$0xff] }
 0x76c   :  { %1668 = vmatmul.mubr.f32.vlgmr.msra.gmra.mrb[18].mxu0 %v1601_v40  ;;  %1739 = vmatmul.mubr.f32.vlgmr.msra.gmra.mrb[14].mxu1 %v1601_v40  ;;  %v1865_v40 = vld [vmem:[%s6458_s5 + $0x258] sm:$0xff] }
 0x76d   :  { %2024 = vmatprep.mubr.f32.mxu0 %v4435_v7  ;;  %2095 = vmatprep.mubr.f32.mxu1 %v4435_v7  ;;  %v3924_v27 = vpack.c.bf16 %v1865_v40, %v1857_v37 }
 0x76e   :  { %3879 = vmatpush1.bf16.msra.mxu0 %v3878_v1  ;;  %3911 = vmatpush1.bf16.msra.mxu1 %v3910_v6  ;;  %v1879_v1 = vld [vmem:[%s6458_s5 + $0x2c8] sm:$0xff]  ;;  %v1881_v6 = vld [vmem:[%s6458_s5 + $0x2d8] sm:$0xff] }
 0x76f   :  { %3881 = vmatprep.subr.bf16.mxu0 %v3880_v18  ;;  %3913 = vmatprep.subr.bf16.mxu1 %v3912_v14  ;;  %v3896_v2 = vpack.c.bf16 %v1879_v1, %v1871_v41  ;;  %v3928_v16 = vpack.c.bf16 %v1881_v6, %v1873_v47  ;;  %v3898_v18 = vpack.c.bf16 %v1878_v15, %v1870_v9  ;;  %v1887_v14 = vld [vmem:[%s6458_s5 + $0x308] sm:$0xff] }
 0x772   :  { %3883 = vmatpush1.bf16.msra.mxu0 %v3882_v36  ;;  %3915 = vmatpush1.bf16.msra.mxu1 %v3914_v34  ;;  %v1895_v36 = vld [vmem:[%s6458_s5 + $0x348] sm:$0xff]  ;;  %v1897_v34 = vld [vmem:[%s6458_s5 + $0x358] sm:$0xff] }
 0x773   :  { %3885 = vmatprep.subr.bf16.mxu0 %v3884_v56  ;;  %3917 = vmatprep.subr.bf16.mxu1 %v3916_v19  ;;  %v3900_v33 = vpack.c.bf16 %v1895_v36, %v1887_v14  ;;  %v3932_v52 = vpack.c.bf16 %v1897_v34, %v1889_v38  ;;  %v3902_v56 = vpack.c.bf16 %v1894_v42, %v1886_v39  ;;  %v1903_v19 = vld [vmem:[%s6458_s5 + $0x388] sm:$0xff]  ;;  %v1794_v34 = vld [vmem:[%s6458_s5 + $0x20] sm:$0xff]  ;;  %v1804_v42 = vld [vmem:[%s6458_s5 + $0x70] sm:$0xff] }
 0x774   :  { %v1802_v39 = vld [vmem:[%s6458_s5 + $0x60] sm:$0xff] }
 0x776   :  { %3887 = vmatpush1.bf16.msra.mxu0 %v3886_v26  ;;  %3919 = vmatpush1.bf16.msra.mxu1 %v3918_v44  ;;  %v1911_v26 = vld [vmem:[%s6458_s5 + $0x3c8] sm:$0xff]  ;;  %v1913_v44 = vld [vmem:[%s6458_s5 + $0x3d8] sm:$0xff] }
 0x777   :  { %3889 = vmatprep.subr.bf16.mxu0 %v3888_v54  ;;  %3921 = vmatprep.subr.bf16.mxu1 %v3920_v4  ;;  %v3904_v43 = vpack.c.bf16 %v1911_v26, %v1903_v19  ;;  %v3936_v32 = vpack.c.bf16 %v1913_v44, %v1905_v35  ;;  %v3906_v54 = vpack.c.bf16 %v1910_v49, %v1902_v46  ;;  %v1810_v26 = vld [vmem:[%s6458_s5 + $0xa0] sm:$0xff]  ;;  %v1820_v49 = vld [vmem:[%s6458_s5 + $0xf0] sm:$0xff] }
 0x778   :  { %v3938_v4 = vpack.c.bf16 %v1912_v61, %v1904_v55  ;;  %v3974_v19 = vpack.c.bf16 %v1804_v42, %v1796_v28  ;;  %v1818_v35 = vld [vmem:[%s6458_s5 + $0xe0] sm:$0xff]  ;;  %v3976_v46 = vpack.c.bf16 %v1821_v8, %v1813_v3  ;;  %v1829_v61 = vld [vmem:[%s6458_s5 + $0x138] sm:$0xff]  ;;  %v1884_v3 = vld [vmem:[%s6458_s5 + $0x2f0] sm:$0xff] }
 0x779   :  { %v1882_v28 = vld [vmem:[%s6458_s5 + $0x2e0] sm:$0xff]  ;;  %v1891_v8 = vld [vmem:[%s6458_s5 + $0x328] sm:$0xff] }
 0x77a   :  { %3891 = vmatpush1.bf16.msra.mxu0 %v3890_v5  ;;  %3923 = vmatpush1.bf16.msra.mxu1 %v3922_v20  ;;  %v1803_v5 = vld [vmem:[%s6458_s5 + $0x68] sm:$0xff] }
 0x77b   :  { %3893 = vmatprep.subr.bf16.mxu0 %v3892_v57  ;;  %3925 = vmatprep.subr.bf16.mxu1 %v3924_v27  ;;  %v3940_v20 = vpack.c.bf16 %v1803_v5, %v1795_v62  ;;  %v1837_v62 = vld [vmem:[%s6458_s5 + $0x178] sm:$0xff] }
 0x77e   :  { %3895 = vmatpush1.bf16.msra.mxu0 %v3894_v51  ;;  %3927 = vmatpush1.bf16.msra.mxu1 %v3926_v59 }
 0x77f   :  { %3897 = vmatprep.subr.bf16.mxu0 %v3896_v2  ;;  %3929 = vmatprep.subr.bf16.mxu1 %v3928_v16 }
 0x782   :  { %3899 = vmatpush1.bf16.msra.mxu0 %v3898_v18  ;;  %3931 = vmatpush1.bf16.msra.mxu1 %v3930_v24 }
 0x783   :  { %3901 = vmatprep.subr.bf16.mxu0 %v3900_v33  ;;  %3933 = vmatprep.subr.bf16.mxu1 %v3932_v52  ;;  %v1811_v52 = vld [vmem:[%s6458_s5 + $0xa8] sm:$0xff] }
 0x786   :  { %3903 = vmatpush1.bf16.msra.mxu0 %v3902_v56  ;;  %3935 = vmatpush1.bf16.msra.mxu1 %v3934_v17  ;;  %v1819_v56 = vld [vmem:[%s6458_s5 + $0xe8] sm:$0xff]  ;;  %v3942_v17 = vpack.c.bf16 %v1802_v39, %v1794_v34  ;;  %v1874_v39 = vld [vmem:[%s6458_s5 + $0x2a0] sm:$0xff] }
 0x787   :  { %3905 = vmatprep.subr.bf16.mxu0 %v3904_v43  ;;  %3937 = vmatprep.subr.bf16.mxu1 %v3936_v32  ;;  %v1812_v43 = vld [vmem:[%s6458_s5 + $0xb0] sm:$0xff]  ;;  %v3944_v44 = vpack.c.bf16 %v1819_v56, %v1811_v52  ;;  %v1827_v32 = vld [vmem:[%s6458_s5 + $0x128] sm:$0xff] }
 0x788   :  { %v3978_v5 = vpack.c.bf16 %v1820_v49, %v1812_v43  ;;  %v1876_v56 = vld [vmem:[%s6458_s5 + $0x2b0] sm:$0xff] }
 0x789   :  { %v3994_v43 = vpack.c.bf16 %v1884_v3, %v1876_v56  ;;  %v2382_v56 = vld [vmem:[%s6460_s7 + $0x410] sm:$0xff] }
 0x78a   :  { %3907 = vmatpush1.bf16.msra.mxu0 %v3906_v54  ;;  %3939 = vmatpush1.bf16.msra.mxu1 %v3938_v4  ;;  %v1835_v54 = vld [vmem:[%s6458_s5 + $0x168] sm:$0xff]  ;;  %v3946_v4 = vpack.c.bf16 %v1818_v35, %v1810_v26  ;;  %v1901_v26 = vld [vmem:[%s6458_s5 + $0x378] sm:$0xff]  ;;  %v3962_v35 = vpack.c.bf16 %v1882_v28, %v1874_v39  ;;  %v2430_v39 = vld [vmem:[%s6460_s7 + $0x590] sm:$0xff] }
 0x78b   :  { %3941 = vmatprep.subr.bf16.mxu0 %v3940_v20  ;;  %3973 = vmatprep.subr.bf16.mxu1 %v3972_v21  ;;  %v3948_v20 = vpack.c.bf16 %v1835_v54, %v1827_v32  ;;  %v3980_v21 = vpack.c.bf16 %v1837_v62, %v1829_v61  ;;  %v1892_v54 = vld [vmem:[%s6458_s5 + $0x330] sm:$0xff]  ;;  %v1907_v62 = vld [vmem:[%s6458_s5 + $0x3a8] sm:$0xff] }
 0x78c   :  { %v1900_v61 = vld [vmem:[%s6458_s5 + $0x370] sm:$0xff] }
 0x83f   :  { %v1669_v30 = vpop.f32.mrb[18].mxu0  ;;  %v1740_v37 = vpop.f32.mrb[14].mxu1 }
 0x840   :  { %v1749_v57 = vrot.slane %v1669_v30, 1  ;;  %v1671_v40 = vpop.f32.mrb[19].mxu0  ;;  %v1742_v45 = vpop.f32.mrb[15].mxu1  ;;  %v1751_v1 = vrot.slane %v1740_v37, 1  ;;  %v1828_v30 = vld [vmem:[%s6458_s5 + $0x130] sm:$0xff] }
 0x841   :  { %v1750_v60 = vrot.slane %v1671_v40, 1  ;;  %v1752_v59 = vrot.slane %v1742_v45, 1  ;;  %v1836_v37 = vld [vmem:[%s6458_s5 + $0x170] sm:$0xff]  ;;  %v1851_v40 = vld [vmem:[%s6458_s5 + $0x1e8] sm:$0xff]  ;;  %v1845_v45 = vld [vmem:[%s6458_s5 + $0x1b8] sm:$0xff] }
 0x842   :  { %v1757_v27 = vadd.f32 %v1749_v57, %v4936_v0  ;;  %v1759_v2 = vadd.f32 %v1751_v1, %v4946_v23  ;;  %v1843_v57 = vld [vmem:[%s6458_s5 + $0x1a8] sm:$0xff]  ;;  %v1844_v1 = vld [vmem:[%s6458_s5 + $0x1b0] sm:$0xff] }
 0x843   :  { %v1758_v51 = vadd.f32 %v1750_v60, %v4934_v63  ;;  %v1760_v41 = vadd.f32 %v1752_v59, %v4948_v25  ;;  %v1853_v60 = vld [vmem:[%s6458_s5 + $0x1f8] sm:$0xff]  ;;  %v3952_v59 = vpack.c.bf16 %v1851_v40, %v1843_v57  ;;  %v1908_v40 = vld [vmem:[%s6458_s5 + $0x3b0] sm:$0xff] }
 0x844   :  { %v3116_v29 = vmul.f32 -1.442695, %v1757_v27  ;;  %v3950_v27 = vpack.c.bf16 %v1834_v13, %v1826_v12  ;;  %v1917_v12 = vld [vmem:[%s6458_s5 + $0x3f8] sm:$0xff] }
 0x845   :  { %v3117_v58 = vmul.f32 -1.442695, %v1758_v51  ;;  %v3118_v47 = vmul.f32 -1.442695, %v1760_v41  ;;  %v3982_v51 = vpack.c.bf16 %v1836_v37, %v1828_v30  ;;  %v3984_v41 = vpack.c.bf16 %v1853_v60, %v1845_v45  ;;  %v1914_v30 = vld [vmem:[%s6458_s5 + $0x3e0] sm:$0xff]  ;;  %v1916_v45 = vld [vmem:[%s6458_s5 + $0x3f0] sm:$0xff] }
 0x846   :  { %4395 = vpow2.f32 %v3116_v29  ;;  %v1842_v29 = vld [vmem:[%s6458_s5 + $0x1a0] sm:$0xff]  ;;  %v2393_v60 = vld [vmem:[%s6460_s7 + $0x468] sm:$0xff] }
 0x847   :  { %4397 = vpow2.f32 %v3117_v58  ;;  %v1850_v58 = vld [vmem:[%s6458_s5 + $0x1e0] sm:$0xff] }
 0x848   :  { %4399 = vpow2.f32 %v3118_v47  ;;  %v1852_v47 = vld [vmem:[%s6458_s5 + $0x1f0] sm:$0xff] }
 0x849   :  { %4401 = vtanh.f32 %v1759_v2  ;;  %v1859_v2 = vld [vmem:[%s6458_s5 + $0x228] sm:$0xff] }
 0x850   :  { %v4396_v6 = vpop.eup %4395 }
 0x851   :  { %v4398_v9 = vpop.eup %4397  ;;  %v1770_v15 = vadd.f32 1.0, %v4396_v6  ;;  %v1867_v6 = vld [vmem:[%s6458_s5 + $0x268] sm:$0xff] }
 0x852   :  { %v1771_v16 = vadd.f32 1.0, %v4398_v9  ;;  %v4400_v63 = vpop.eup %4399  ;;  %v1861_v9 = vld [vmem:[%s6458_s5 + $0x238] sm:$0xff] }
 0x853   :  { %4403 = vrcp.f32 %v1770_v15  ;;  %v4402_v0 = vpop.eup %4401  ;;  %v1772_v25 = vadd.f32 1.0, %v4400_v63  ;;  %v1869_v15 = vld [vmem:[%s6458_s5 + $0x278] sm:$0xff]  ;;  %v3986_v63 = vpack.c.bf16 %v1852_v47, %v1844_v1  ;;  %v2378_v1 = vld [vmem:[%s6460_s7 + $0x3f0] sm:$0xff] }
 0x854   :  { %4405 = vrcp.f32 %v1771_v16  ;;  %v3954_v16 = vpack.c.bf16 %v1850_v58, %v1842_v29  ;;  %v2426_v29 = vld [vmem:[%s6460_s7 + $0x570] sm:$0xff] }
 0x855   :  { %4407 = vrcp.f32 %v1772_v25  ;;  %v1868_v25 = vld [vmem:[%s6458_s5 + $0x270] sm:$0xff] }
 0x85d   :  { %v4404_v18 = vpop.eup %4403 }
 0x85e   :  { %v4406_v22 = vpop.eup %4405  ;;  %v1784_v24 = vmul.f32 %v4404_v18, %v4402_v0  ;;  %v1858_v0 = vld [vmem:[%s6458_s5 + $0x220] sm:$0xff] }
 0x85f   :  { %v1783_v14 = vmul.f32 %v4406_v22, %v1781_v31  ;;  %v4408_v23 = vpop.eup %4407  ;;  %v1866_v18 = vld [vmem:[%s6458_s5 + $0x260] sm:$0xff]  ;;  %v3956_v31 = vpack.c.bf16 %v1867_v6, %v1859_v2  ;;  %v3988_v22 = vpack.c.bf16 %v1869_v15, %v1861_v9  ;;  %v2409_v6 = vld [vmem:[%s6460_s7 + $0x4e8] sm:$0xff]  ;;  %v2410_v9 = vld [vmem:[%s6460_s7 + $0x4f0] sm:$0xff] }
 0x860   :  { %v2395_v15 = vld [vmem:[%s6460_s7 + $0x478] sm:$0xff] }
 0x861   :  { %v1785_v36 = vadd.f32 %v1784_v24, %v1783_v14  ;;  %v1860_v24 = vld [vmem:[%s6458_s5 + $0x230] sm:$0xff]  ;;  %v1875_v14 = vld [vmem:[%s6458_s5 + $0x2a8] sm:$0xff] }
 0x862   :  { %v3990_v34 = vpack.c.bf16 %v1868_v25, %v1860_v24  ;;  %v2380_v24 = vld [vmem:[%s6460_s7 + $0x400] sm:$0xff] }
 0x863   :  { %4409 = vtanh.f32 %v1785_v36  ;;  %v1883_v36 = vld [vmem:[%s6458_s5 + $0x2e8] sm:$0xff] }
 0x864   :  { %v3960_v42 = vpack.c.bf16 %v1883_v36, %v1875_v14  ;;  %v2411_v36 = vld [vmem:[%s6460_s7 + $0x4f8] sm:$0xff] }
 0x86d   :  { %v4410_v38 = vpop.eup %4409 }
 0x86e   :  { %v1787_v33 = vmul.f32 %v4410_v38, %v4408_v23  ;;  %v1877_v23 = vld [vmem:[%s6458_s5 + $0x2b8] sm:$0xff] }
 0x86f   :  { %v1885_v38 = vld [vmem:[%s6458_s5 + $0x2f8] sm:$0xff] }
 0x870   :  { %1788 = vst [vmem:[#allocation2] sm:$0x80] %v1787_v33  ;;  %v3958_v33 = vpack.c.bf16 %v1866_v18, %v1858_v0  ;;  %v3992_v52 = vpack.c.bf16 %v1885_v38, %v1877_v23  ;;  %v2428_v0 = vld [vmem:[%s6460_s7 + $0x580] sm:$0xff]  ;;  %v2397_v38 = vld [vmem:[%s6460_s7 + $0x488] sm:$0xff] }
 0x871   :  { %v2412_v23 = vld [vmem:[%s6460_s7 + $0x500] sm:$0xff] }
 0x877   :  { %v5458_v55 = vld [vmem:[#allocation2] sm:$0xff] }
 0x878   :  { %2025 = vmatmul.mubr.f32.vlgmr.msra.gmra.mrb[20].mxu0 %v5458_v55  ;;  %2096 = vmatmul.mubr.f32.vlgmr.msra.gmra.mrb[16].mxu1 %v5458_v55 }
 0x879   :  { %3943 = vmatpush1.bf16.msra.mxu0 %v3942_v17  ;;  %3975 = vmatpush1.bf16.msra.mxu1 %v3974_v19  ;;  %v1899_v17 = vld [vmem:[%s6458_s5 + $0x368] sm:$0xff]  ;;  %v1893_v19 = vld [vmem:[%s6458_s5 + $0x338] sm:$0xff] }
 0x87a   :  { %3945 = vmatprep.subr.bf16.mxu0 %v3944_v44  ;;  %3977 = vmatprep.subr.bf16.mxu1 %v3976_v46  ;;  %v1890_v44 = vld [vmem:[%s6458_s5 + $0x320] sm:$0xff]  ;;  %v3964_v49 = vpack.c.bf16 %v1899_v17, %v1891_v8  ;;  %v3996_v32 = vpack.c.bf16 %v1901_v26, %v1893_v19  ;;  %v2414_v17 = vld [vmem:[%s6460_s7 + $0x510] sm:$0xff]  ;;  %v2399_v19 = vld [vmem:[%s6460_s7 + $0x498] sm:$0xff] }
 0x87b   :  { %2166 = vmatprep.mubr.f32.mxu0 %v4435_v7  ;;  %2237 = vmatprep.mubr.f32.mxu1 %v4435_v7  ;;  %v1898_v46 = vld [vmem:[%s6458_s5 + $0x360] sm:$0xff] }
 0x87c   :  { %v3966_v13 = vpack.c.bf16 %v1898_v46, %v1890_v44  ;;  %v2400_v26 = vld [vmem:[%s6460_s7 + $0x4a0] sm:$0xff] }
 0x87d   :  { %3947 = vmatpush1.bf16.msra.mxu0 %v3946_v4  ;;  %3979 = vmatpush1.bf16.msra.mxu1 %v3978_v5  ;;  %v1915_v4 = vld [vmem:[%s6458_s5 + $0x3e8] sm:$0xff]  ;;  %v1909_v5 = vld [vmem:[%s6458_s5 + $0x3b8] sm:$0xff] }
 0x87e   :  { %3949 = vmatprep.subr.bf16.mxu0 %v3948_v20  ;;  %3981 = vmatprep.subr.bf16.mxu1 %v3980_v21  ;;  %v3998_v20 = vpack.c.bf16 %v1900_v61, %v1892_v54  ;;  %v1906_v21 = vld [vmem:[%s6458_s5 + $0x3a0] sm:$0xff]  ;;  %v3968_v37 = vpack.c.bf16 %v1915_v4, %v1907_v62  ;;  %v4000_v57 = vpack.c.bf16 %v1917_v12, %v1909_v5  ;;  %v2415_v62 = vld [vmem:[%s6460_s7 + $0x518] sm:$0xff]  ;;  %v2401_v5 = vld [vmem:[%s6460_s7 + $0x4a8] sm:$0xff] }
 0x87f   :  { %v3970_v58 = vpack.c.bf16 %v1914_v30, %v1906_v21  ;;  %v4016_v54 = vpack.c.bf16 %v2400_v26, %v2399_v19  ;;  %v2416_v4 = vld [vmem:[%s6460_s7 + $0x520] sm:$0xff]  ;;  %v2402_v12 = vld [vmem:[%s6460_s7 + $0x4b0] sm:$0xff]  ;;  %v2423_v26 = vld [vmem:[%s6460_s7 + $0x558] sm:$0xff] }
 0x880   :  { %v4050_v30 = vpack.c.bf16 %v2416_v4, %v2415_v62  ;;  %v2441_v4 = vld [vmem:[%s6460_s7 + $0x5e8] sm:$0xff] }
 0x881   :  { %3951 = vmatpush1.bf16.msra.mxu0 %v3950_v27  ;;  %3983 = vmatpush1.bf16.msra.mxu1 %v3982_v51  ;;  %v2394_v27 = vld [vmem:[%s6460_s7 + $0x470] sm:$0xff]  ;;  %v2425_v51 = vld [vmem:[%s6460_s7 + $0x568] sm:$0xff] }
 0x882   :  { %3953 = vmatprep.subr.bf16.mxu0 %v3952_v59  ;;  %3985 = vmatprep.subr.bf16.mxu1 %v3984_v41  ;;  %v4002_v59 = vpack.c.bf16 %v1916_v45, %v1908_v40  ;;  %v2377_v41 = vld [vmem:[%s6460_s7 + $0x3e8] sm:$0xff]  ;;  %v4004_v47 = vpack.c.bf16 %v2394_v27, %v2393_v60  ;;  %v4036_v2 = vpack.c.bf16 %v2426_v29, %v2425_v51  ;;  %v2418_v27 = vld [vmem:[%s6460_s7 + $0x530] sm:$0xff]  ;;  %v2403_v51 = vld [vmem:[%s6460_s7 + $0x4b8] sm:$0xff] }
 0x883   :  { %v4006_v18 = vpack.c.bf16 %v2378_v1, %v2377_v41  ;;  %v4020_v40 = vpack.c.bf16 %v2402_v12, %v2401_v5  ;;  %v2417_v60 = vld [vmem:[%s6460_s7 + $0x528] sm:$0xff]  ;;  %v2404_v29 = vld [vmem:[%s6460_s7 + $0x4c0] sm:$0xff] }
 0x884   :  { %v4054_v1 = vpack.c.bf16 %v2418_v27, %v2417_v60  ;;  %v2443_v27 = vld [vmem:[%s6460_s7 + $0x5f8] sm:$0xff] }
 0x885   :  { %3955 = vmatpush1.bf16.msra.mxu0 %v3954_v16  ;;  %3987 = vmatpush1.bf16.msra.mxu1 %v3986_v63  ;;  %v2396_v16 = vld [vmem:[%s6460_s7 + $0x480] sm:$0xff]  ;;  %v2427_v63 = vld [vmem:[%s6460_s7 + $0x578] sm:$0xff] }
 0x886   :  { %3957 = vmatprep.subr.bf16.mxu0 %v3956_v31  ;;  %3989 = vmatprep.subr.bf16.mxu1 %v3988_v22  ;;  %v4038_v31 = vpack.c.bf16 %v2410_v9, %v2409_v6  ;;  %v2379_v22 = vld [vmem:[%s6460_s7 + $0x3f8] sm:$0xff]  ;;  %v4008_v25 = vpack.c.bf16 %v2396_v16, %v2395_v15  ;;  %v4040_v14 = vpack.c.bf16 %v2428_v0, %v2427_v63  ;;  %v2420_v16 = vld [vmem:[%s6460_s7 + $0x540] sm:$0xff]  ;;  %v2405_v63 = vld [vmem:[%s6460_s7 + $0x4c8] sm:$0xff] }
 0x887   :  { %v4010_v28 = vpack.c.bf16 %v2380_v24, %v2379_v22  ;;  %v4024_v6 = vpack.c.bf16 %v2404_v29, %v2403_v51  ;;  %v2419_v15 = vld [vmem:[%s6460_s7 + $0x538] sm:$0xff]  ;;  %v2406_v0 = vld [vmem:[%s6460_s7 + $0x4d0] sm:$0xff] }
 0x888   :  { %v4058_v24 = vpack.c.bf16 %v2420_v16, %v2419_v15  ;;  %v2445_v15 = vld [vmem:[%s6460_s7 + $0x608] sm:$0xff] }
 0x889   :  { %3959 = vmatpush1.bf16.msra.mxu0 %v3958_v33  ;;  %3991 = vmatpush1.bf16.msra.mxu1 %v3990_v34  ;;  %v2398_v33 = vld [vmem:[%s6460_s7 + $0x490] sm:$0xff]  ;;  %v2429_v34 = vld [vmem:[%s6460_s7 + $0x588] sm:$0xff] }
 0x88a   :  { %3961 = vmatprep.subr.bf16.mxu0 %v3960_v42  ;;  %3993 = vmatprep.subr.bf16.mxu1 %v3992_v52  ;;  %v4042_v42 = vpack.c.bf16 %v2412_v23, %v2411_v36  ;;  %v2381_v52 = vld [vmem:[%s6460_s7 + $0x408] sm:$0xff]  ;;  %v4012_v3 = vpack.c.bf16 %v2398_v33, %v2397_v38  ;;  %v4044_v8 = vpack.c.bf16 %v2430_v39, %v2429_v34  ;;  %v2390_v23 = vld [vmem:[%s6460_s7 + $0x450] sm:$0xff] }
 0x88b   :  { %v4014_v44 = vpack.c.bf16 %v2382_v56, %v2381_v52  ;;  %v2421_v38 = vld [vmem:[%s6460_s7 + $0x548] sm:$0xff]  ;;  %v2422_v33 = vld [vmem:[%s6460_s7 + $0x550] sm:$0xff]  ;;  %v2439_v52 = vld [vmem:[%s6460_s7 + $0x5d8] sm:$0xff] }
 0x88c   :  { %v4062_v39 = vpack.c.bf16 %v2422_v33, %v2421_v38  ;;  %v2479_v38 = vld [vmem:[%s6460_s7 + $0x718] sm:$0xff]  ;;  %v2480_v33 = vld [vmem:[%s6460_s7 + $0x720] sm:$0xff] }
 0x88d   :  { %3963 = vmatpush1.bf16.msra.mxu0 %v3962_v35  ;;  %3995 = vmatpush1.bf16.msra.mxu1 %v3994_v43  ;;  %v2431_v35 = vld [vmem:[%s6460_s7 + $0x598] sm:$0xff]  ;;  %v2432_v43 = vld [vmem:[%s6460_s7 + $0x5a0] sm:$0xff] }
 0x88e   :  { %3965 = vmatprep.subr.bf16.mxu0 %v3964_v49  ;;  %3997 = vmatprep.subr.bf16.mxu1 %v3996_v32  ;;  %v2383_v49 = vld [vmem:[%s6460_s7 + $0x418] sm:$0xff]  ;;  %v2384_v32 = vld [vmem:[%s6460_s7 + $0x420] sm:$0xff]  ;;  %v4048_v61 = vpack.c.bf16 %v2432_v43, %v2431_v35 }
 0x88f   :  { %v4018_v21 = vpack.c.bf16 %v2384_v32, %v2383_v49  ;;  %v2424_v35 = vld [vmem:[%s6460_s7 + $0x560] sm:$0xff]  ;;  %v4436_v32 = vmov 0.0|0.0  }
 0x890   :  { %v4066_v43 = vpack.c.bf16 %v2424_v35, %v2423_v26 }
 0x891   :  { %3967 = vmatpush1.bf16.msra.mxu0 %v3966_v13  ;;  %3999 = vmatpush1.bf16.msra.mxu1 %v3998_v20  ;;  %v2433_v13 = vld [vmem:[%s6460_s7 + $0x5a8] sm:$0xff]  ;;  %v2434_v20 = vld [vmem:[%s6460_s7 + $0x5b0] sm:$0xff] }
 0x892   :  { %3969 = vmatprep.subr.bf16.mxu0 %v3968_v37  ;;  %4001 = vmatprep.subr.bf16.mxu1 %v4000_v57  ;;  %v2385_v37 = vld [vmem:[%s6460_s7 + $0x428] sm:$0xff]  ;;  %v2386_v57 = vld [vmem:[%s6460_s7 + $0x430] sm:$0xff]  ;;  %v4052_v45 = vpack.c.bf16 %v2434_v20, %v2433_v13 }
 0x893   :  { %v4022_v41 = vpack.c.bf16 %v2386_v57, %v2385_v37  ;;  %v2474_v13 = vld [vmem:[%s6460_s7 + $0x6f0] sm:$0xff] }
 0x895   :  { %3971 = vmatpush1.bf16.msra.mxu0 %v3970_v58  ;;  %4003 = vmatpush1.bf16.msra.mxu1 %v4002_v59  ;;  %v2435_v58 = vld [vmem:[%s6460_s7 + $0x5b8] sm:$0xff]  ;;  %v2436_v59 = vld [vmem:[%s6460_s7 + $0x5c0] sm:$0xff] }
 0x896   :  { %4005 = vmatprep.subr.bf16.mxu0 %v4004_v47  ;;  %4037 = vmatprep.subr.bf16.mxu1 %v4036_v2  ;;  %v2387_v47 = vld [vmem:[%s6460_s7 + $0x438] sm:$0xff]  ;;  %v2388_v2 = vld [vmem:[%s6460_s7 + $0x440] sm:$0xff]  ;;  %v4056_v9 = vpack.c.bf16 %v2436_v59, %v2435_v58 }
 0x897   :  { %v4026_v22 = vpack.c.bf16 %v2388_v2, %v2387_v47  ;;  %v2444_v59 = vld [vmem:[%s6460_s7 + $0x600] sm:$0xff]  ;;  %v2461_v47 = vld [vmem:[%s6460_s7 + $0x688] sm:$0xff]  ;;  %v2462_v2 = vld [vmem:[%s6460_s7 + $0x690] sm:$0xff] }
 0x898   :  { %2167 = vmatmul.mubr.f32.vlgmr.msra.gmra.mrb[22].mxu0 %v5458_v55  ;;  %2238 = vmatmul.mubr.f32.vlgmr.msra.gmra.mrb[18].mxu1 %v5458_v55  ;;  %v2413_v55 = vld [vmem:[%s6460_s7 + $0x508] sm:$0xff]  ;;  %v4076_v16 = vpack.c.bf16 %v2462_v2, %v2461_v47 }
 0x899   :  { %4007 = vmatpush3.bf16.msra.mxu0 %v4006_v18  ;;  %4039 = vmatpush3.bf16.msra.mxu1 %v4038_v31  ;;  %v4046_v46 = vpack.c.bf16 %v2414_v17, %v2413_v55  ;;  %v2437_v18 = vld [vmem:[%s6460_s7 + $0x5c8] sm:$0xff]  ;;  %v2438_v31 = vld [vmem:[%s6460_s7 + $0x5d0] sm:$0xff]  ;;  %v2392_v55 = vld [vmem:[%s6460_s7 + $0x460] sm:$0xff] }
 0x89a   :  { %4009 = vmatprep.subr.bf16.mxu0 %v4008_v25  ;;  %4041 = vmatprep.subr.bf16.mxu1 %v4040_v14  ;;  %v2389_v25 = vld [vmem:[%s6460_s7 + $0x448] sm:$0xff]  ;;  %v4028_v14 = vpack.c.bf16 %v2406_v0, %v2405_v63  ;;  %v4060_v36 = vpack.c.bf16 %v2438_v31, %v2437_v18  ;;  %v2446_v63 = vld [vmem:[%s6460_s7 + $0x610] sm:$0xff]  ;;  %v2463_v31 = vld [vmem:[%s6460_s7 + $0x698] sm:$0xff] }
 0x89b   :  { %v4030_v34 = vpack.c.bf16 %v2390_v23, %v2389_v25  ;;  %v2477_v0 = vld [vmem:[%s6460_s7 + $0x708] sm:$0xff]  ;;  %v2478_v18 = vld [vmem:[%s6460_s7 + $0x710] sm:$0xff]  ;;  %v2448_v23 = vld [vmem:[%s6460_s7 + $0x620] sm:$0xff] }
 0x89c   :  { %v4107_v25 = vpack.c.bf16 %v2478_v18, %v2477_v0  ;;  %v2252_v0 = vld [vmem:[%s6460_s7] sm:$0xff]  ;;  %v2253_v18 = vld [vmem:[%s6460_s7 + $0x8] sm:$0xff] }
 0x89d   :  { %4011 = vmatpush3.bf16.msra.mxu0 %v4010_v28  ;;  %4043 = vmatpush3.bf16.msra.mxu1 %v4042_v42  ;;  %v2407_v28 = vld [vmem:[%s6460_s7 + $0x4d8] sm:$0xff]  ;;  %v2408_v42 = vld [vmem:[%s6460_s7 + $0x4e0] sm:$0xff] }
 0x89e   :  { %4013 = vmatprep.subr.bf16.mxu0 %v4012_v3  ;;  %4045 = vmatprep.subr.bf16.mxu1 %v4044_v8  ;;  %v4032_v56 = vpack.c.bf16 %v2408_v42, %v2407_v28  ;;  %v2440_v3 = vld [vmem:[%s6460_s7 + $0x5e0] sm:$0xff]  ;;  %v2391_v8 = vld [vmem:[%s6460_s7 + $0x458] sm:$0xff]  ;;  %v4110_v42 = vpack.c.bf16 %v2480_v33, %v2479_v38 }
 0x89f   :  { %v4064_v17 = vpack.c.bf16 %v2440_v3, %v2439_v52  ;;  %v4034_v19 = vpack.c.bf16 %v2392_v55, %v2391_v8  ;;  %v2449_v52 = vld [vmem:[%s6460_s7 + $0x628] sm:$0xff]  ;;  %v2450_v3 = vld [vmem:[%s6460_s7 + $0x630] sm:$0xff] }
 0x8a0   :  { %v2481_v8 = vld [vmem:[%s6460_s7 + $0x728] sm:$0xff]  ;;  %v2482_v55 = vld [vmem:[%s6460_s7 + $0x730] sm:$0xff]  ;;  %v4086_v26 = vpack.c.bf16 %v2450_v3, %v2449_v52  ;;  %v2492_v52 = vld [vmem:[%s6460_s7 + $0x780] sm:$0xff] }
 0x8a1   :  { %4015 = vmatpush3.bf16.msra.mxu0 %v4014_v44  ;;  %4047 = vmatpush3.bf16.msra.mxu1 %v4046_v46  ;;  %v2457_v44 = vld [vmem:[%s6460_s7 + $0x668] sm:$0xff]  ;;  %v2458_v46 = vld [vmem:[%s6460_s7 + $0x670] sm:$0xff]  ;;  %v4113_v35 = vpack.c.bf16 %v2482_v55, %v2481_v8  ;;  %v2255_v3 = vld [vmem:[%s6460_s7 + $0x18] sm:$0xff] }
 0x8a2   :  { %4017 = vmatprep.subr.bf16.mxu0 %v4016_v54  ;;  %4049 = vmatprep.subr.bf16.mxu1 %v4048_v61  ;;  %v4068_v49 = vpack.c.bf16 %v2458_v46, %v2457_v44  ;;  %v5806_v54 = vld [vmem:[%s6459_s6] sm:$0xff]  ;;  %v2273_v55 = vld [vmem:[%s6460_s7 + $0xa8] sm:$0xff] }
 0x8a3   :  { %v1927_v61 = vrot.slane %v5806_v54, %v74_v50  ;;  %v1935_v62 = vrot.slane %v5806_v54, %v82_v11  ;;  %v1923_v5 = vrot.slane %v5806_v54, %v70_v53  ;;  %v1931_v12 = vrot.slane %v5806_v54, %v78_v10  ;;  %v2442_v50 = vld [vmem:[%s6460_s7 + $0x5f0] sm:$0xff]  ;;  %v2473_v11 = vld [vmem:[%s6460_s7 + $0x6e8] sm:$0xff]  ;;  %v2459_v53 = vld [vmem:[%s6460_s7 + $0x678] sm:$0xff] }
 0x8a4   :  { %v2460_v10 = vld [vmem:[%s6460_s7 + $0x680] sm:$0xff]  ;;  %v4101_v60 = vpack.c.bf16 %v2474_v13, %v2473_v11  ;;  %v2454_v13 = vld [vmem:[%s6460_s7 + $0x650] sm:$0xff] }
 0x8a5   :  { %4019 = vmatpush3.bf16.msra.mxu0 %v4018_v21  ;;  %4051 = vmatpush3.bf16.msra.mxu1 %v4050_v30  ;;  %v4072_v58 = vpack.c.bf16 %v2460_v10, %v2459_v53  ;;  %v2452_v46 = vld [vmem:[%s6460_s7 + $0x640] sm:$0xff]  ;;  %v2471_v53 = vld [vmem:[%s6460_s7 + $0x6d8] sm:$0xff] }
 0x8a6   :  { %4021 = vmatprep.subr.bf16.mxu0 %v4020_v40  ;;  %4053 = vmatprep.subr.bf16.mxu1 %v4052_v45  ;;  %v4070_v45 = vpack.c.bf16 %v2442_v50, %v2441_v4  ;;  %v2470_v4 = vld [vmem:[%s6460_s7 + $0x6d0] sm:$0xff]  ;;  %v2453_v50 = vld [vmem:[%s6460_s7 + $0x648] sm:$0xff]  ;;  %v2472_v10 = vld [vmem:[%s6460_s7 + $0x6e0] sm:$0xff] }
 0x8a7   :  { %v2272_v8 = vld [vmem:[%s6460_s7 + $0xa0] sm:$0xff] }
 0x8a9   :  { %4023 = vmatpush3.bf16.msra.mxu0 %v4022_v41  ;;  %4055 = vmatpush3.bf16.msra.mxu1 %v4054_v1  ;;  %v2475_v41 = vld [vmem:[%s6460_s7 + $0x6f8] sm:$0xff]  ;;  %v2476_v1 = vld [vmem:[%s6460_s7 + $0x700] sm:$0xff] }
 0x8aa   :  { %4025 = vmatprep.subr.bf16.mxu0 %v4024_v6  ;;  %4057 = vmatprep.subr.bf16.mxu1 %v4056_v9  ;;  %v4074_v6 = vpack.c.bf16 %v2444_v59, %v2443_v27  ;;  %v4104_v9 = vpack.c.bf16 %v2476_v1, %v2475_v41  ;;  %v4096_v27 = vpack.c.bf16 %v2472_v10, %v2471_v53  ;;  %v2268_v59 = vld [vmem:[%s6460_s7 + $0x80] sm:$0xff]  ;;  %v2269_v41 = vld [vmem:[%s6460_s7 + $0x88] sm:$0xff] }
 0x8ab   :  { %v2277_v53 = vld [vmem:[%s6460_s7 + $0xc8] sm:$0xff] }
 0x8ad   :  { %4027 = vmatpush3.bf16.msra.mxu0 %v4026_v22  ;;  %4059 = vmatpush3.bf16.msra.mxu1 %v4058_v24  ;;  %v2464_v22 = vld [vmem:[%s6460_s7 + $0x6a0] sm:$0xff]  ;;  %v4078_v24 = vpack.c.bf16 %v2446_v63, %v2445_v15  ;;  %v2490_v15 = vld [vmem:[%s6460_s7 + $0x770] sm:$0xff]  ;;  %v4142_v63 = vpack.c.bf16 %v2269_v41, %v2268_v59  ;;  %v2499_v59 = vld [vmem:[%s6460_s7 + $0x7b8] sm:$0xff] }
 0x8ae   :  { %4029 = vmatprep.subr.bf16.mxu0 %v4028_v14  ;;  %4061 = vmatprep.subr.bf16.mxu1 %v4060_v36  ;;  %v2447_v14 = vld [vmem:[%s6460_s7 + $0x618] sm:$0xff]  ;;  %v4080_v36 = vpack.c.bf16 %v2464_v22, %v2463_v31 }
 0x8af   :  { %v4082_v28 = vpack.c.bf16 %v2448_v23, %v2447_v14 }
 0x8b1   :  { %4031 = vmatpush3.bf16.msra.mxu0 %v4030_v34  ;;  %4063 = vmatpush3.bf16.msra.mxu1 %v4062_v39  ;;  %v2465_v34 = vld [vmem:[%s6460_s7 + $0x6a8] sm:$0xff]  ;;  %v2466_v39 = vld [vmem:[%s6460_s7 + $0x6b0] sm:$0xff] }
 0x8b2   :  { %4033 = vmatprep.subr.bf16.mxu0 %v4032_v56  ;;  %4065 = vmatprep.subr.bf16.mxu1 %v4064_v17  ;;  %v4084_v56 = vpack.c.bf16 %v2466_v39, %v2465_v34  ;;  %v2467_v17 = vld [vmem:[%s6460_s7 + $0x6b8] sm:$0xff]  ;;  %v4144_v34 = vpack.c.bf16 %v2253_v18, %v2252_v0  ;;  %v2264_v18 = vld [vmem:[%s6460_s7 + $0x60] sm:$0xff] }
 0x8b3   :  { %v2491_v39 = vld [vmem:[%s6460_s7 + $0x778] sm:$0xff] }
 0x8b5   :  { %4035 = vmatpush3.bf16.msra.mxu0 %v4034_v19  ;;  %4067 = vmatpush3.bf16.msra.mxu1 %v4066_v43  ;;  %v2468_v19 = vld [vmem:[%s6460_s7 + $0x6c0] sm:$0xff]  ;;  %v2451_v43 = vld [vmem:[%s6460_s7 + $0x638] sm:$0xff] }
 0x8b6   :  { %4069 = vmatprep.subr.bf16.mxu0 %v4068_v49  ;;  %4100 = vmatprep.subr.bf16.mxu1 %v4436_v32  ;;  %v4088_v44 = vpack.c.bf16 %v2468_v19, %v2467_v17  ;;  %v2483_v49 = vld [vmem:[%s6460_s7 + $0x738] sm:$0xff]  ;;  %v2245_v17 = vld [vmem:[%s6454_s1 + $0x8] sm:$0xff]  ;;  %v4128_v19 = vpack.c.bf16 %v2492_v52, %v2491_v39 }
 0x8b7   :  { %v2501_v39 = vld [vmem:[%s6460_s7 + $0x7c8] sm:$0xff]  ;;  %v2267_v52 = vld [vmem:[%s6460_s7 + $0x78] sm:$0xff] }
 0x94b   :  { %v2026_v20 = vpop.f32.mrb[20].mxu0  ;;  %v2097_v21 = vpop.f32.mrb[16].mxu1 }
 0x94c   :  { %v2028_v30 = vpop.f32.mrb[21].mxu0  ;;  %v2099_v37 = vpop.f32.mrb[17].mxu1  ;;  %v2027_v51 = vadd.f32 %v2026_v20, %v1923_v5  ;;  %v2098_v29 = vadd.f32 %v2097_v21, %v1931_v12  ;;  %v4090_v5 = vpack.c.bf16 %v2452_v46, %v2451_v43  ;;  %v2485_v20 = vld [vmem:[%s6460_s7 + $0x748] sm:$0xff]  ;;  %v2486_v21 = vld [vmem:[%s6460_s7 + $0x750] sm:$0xff]  ;;  %v4150_v43 = vpack.c.bf16 %v2273_v55, %v2272_v8  ;;  %v2256_v46 = vld [vmem:[%s6460_s7 + $0x20] sm:$0xff] }
 0x94d   :  { %v2029_v57 = vadd.f32 %v2028_v30, %v1927_v61  ;;  %v2100_v40 = vadd.f32 %v2099_v37, %v1935_v62  ;;  %v2484_v61 = vld [vmem:[%s6460_s7 + $0x740] sm:$0xff]  ;;  %v2469_v62 = vld [vmem:[%s6460_s7 + $0x6c8] sm:$0xff]  ;;  %v1942_v30 = vsub.s32 5, %v4923_v48  ;;  %v4094_v37 = vpack.c.bf16 %v2454_v13, %v2453_v50  ;;  %v2258_v13 = vld [vmem:[%s6460_s7 + $0x30] sm:$0xff] }
 0x94e   :  { %v4116_v12 = vpack.c.bf16 %v2484_v61, %v2483_v49  ;;  %v4092_v11 = vpack.c.bf16 %v2470_v4, %v2469_v62  ;;  %v2257_v49 = vld [vmem:[%s6460_s7 + $0x28] sm:$0xff]  ;;  %v2274_v61 = vld [vmem:[%s6460_s7 + $0xb0] sm:$0xff]  ;;  %v2275_v62 = vld [vmem:[%s6460_s7 + $0xb8] sm:$0xff] }
 0x94f   :  { %2570 = vmatprep.mubr.f32.mxu0 %v2029_v57  ;;  %2640 = vmatprep.mubr.f32.mxu1 %v2100_v40  ;;  %v4119_v57 = vpack.c.bf16 %v2486_v21, %v2485_v20  ;;  %v1950_v40 = vsub.s32 7, %v4923_v48  ;;  %v1943_v1 = vrot.slane %v5806_v54, %v1942_v30  ;;  %v4154_v50 = vpack.c.bf16 %v2275_v62, %v2274_v61  ;;  %v2259_v20 = vld [vmem:[%s6460_s7 + $0x38] sm:$0xff]  ;;  %v2276_v21 = vld [vmem:[%s6460_s7 + $0xc0] sm:$0xff]  ;;  %v2333_v55 = vld [vmem:[%s6460_s7 + $0x288] sm:$0xff] }
 0x950   :  { %2571 = vmatmul.mubr.f32.vlgmr.msra.gmra.mrb[24].mxu0 %v2027_v51  ;;  %2641 = vmatmul.mubr.f32.vlgmr.msra.gmra.mrb[20].mxu1 %v2098_v29  ;;  %v2456_v51 = vld [vmem:[%s6460_s7 + $0x660] sm:$0xff]  ;;  %v2487_v29 = vld [vmem:[%s6460_s7 + $0x758] sm:$0xff]  ;;  %v4156_v30 = vpack.c.bf16 %v2259_v20, %v2258_v13  ;;  %v2317_v62 = vld [vmem:[%s6460_s7 + $0x208] sm:$0xff] }
 0x951   :  { %4071 = vmatpush3.bf16.msra.mxu0 %v4070_v45  ;;  %4102 = vmatpush1.bf16.msra.mxu1 %v4101_v60  ;;  %v2455_v45 = vld [vmem:[%s6460_s7 + $0x658] sm:$0xff]  ;;  %v1938_v60 = vsub.s32 4, %v4923_v48  ;;  %v1951_v47 = vrot.slane %v5806_v54, %v1950_v40  ;;  %v2498_v40 = vld [vmem:[%s6460_s7 + $0x7b0] sm:$0xff]  ;;  %v2332_v8 = vld [vmem:[%s6460_s7 + $0x280] sm:$0xff] }
 0x952   :  { %4073 = vmatprep.subr.bf16.mxu0 %v4072_v58  ;;  %4103 = vmatprep.subr.bf16.mxu1 %v4436_v32  ;;  %v2488_v58 = vld [vmem:[%s6460_s7 + $0x760] sm:$0xff]  ;;  %v4098_v2 = vpack.c.bf16 %v2456_v51, %v2455_v45  ;;  %v2279_v51 = vld [vmem:[%s6460_s7 + $0xd8] sm:$0xff]  ;;  %v2289_v13 = vld [vmem:[%s6460_s7 + $0x128] sm:$0xff] }
 0x953   :  { %v2260_v45 = vld [vmem:[%s6460_s7 + $0x40] sm:$0xff] }
 0x954   :  { %v2316_v61 = vld [vmem:[%s6460_s7 + $0x200] sm:$0xff] }
 0x955   :  { %4075 = vmatpush3.bf16.msra.mxu0 %v4074_v6  ;;  %4105 = vmatpush1.bf16.msra.mxu1 %v4104_v9  ;;  %v4122_v6 = vpack.c.bf16 %v2488_v58, %v2487_v29  ;;  %v2489_v9 = vld [vmem:[%s6460_s7 + $0x768] sm:$0xff]  ;;  %v2244_v20 = vld [vmem:[%s6454_s1] sm:$0xff] }
 0x956   :  { %4077 = vmatprep.subr.bf16.mxu0 %v4076_v16  ;;  %4106 = vmatprep.subr.bf16.mxu1 %v4436_v32  ;;  %v1939_v16 = vrot.slane %v5806_v54, %v1938_v60  ;;  %v4125_v23 = vpack.c.bf16 %v2490_v15, %v2489_v9  ;;  %v2261_v60 = vld [vmem:[%s6460_s7 + $0x48] sm:$0xff]  ;;  %v1946_v15 = vsub.s32 6, %v4923_v48  ;;  %v2300_v48 = vld [vmem:[%s6460_s7 + $0x180] sm:$0xff] }
 0x957   :  { %v4160_v58 = vpack.c.bf16 %v2261_v60, %v2260_v45  ;;  %v2281_v9 = vld [vmem:[%s6460_s7 + $0xe8] sm:$0xff]  ;;  %v2336_v60 = vld [vmem:[%s6460_s7 + $0x2a0] sm:$0xff] }
 0x959   :  { %4079 = vmatpush3.bf16.msra.mxu0 %v4078_v24  ;;  %4108 = vmatpush1.bf16.msra.mxu1 %v4107_v25  ;;  %v2270_v24 = vld [vmem:[%s6460_s7 + $0x90] sm:$0xff]  ;;  %v2271_v25 = vld [vmem:[%s6460_s7 + $0x98] sm:$0xff] }
 0x95a   :  { %4081 = vmatprep.subr.bf16.mxu0 %v4080_v36  ;;  %4109 = vmatprep.subr.bf16.mxu1 %v4436_v32 }
 0x95d   :  { %4083 = vmatpush3.bf16.msra.mxu0 %v4082_v28  ;;  %4111 = vmatpush1.bf16.msra.mxu1 %v4110_v42  ;;  %v4146_v42 = vpack.c.bf16 %v2271_v25, %v2270_v24  ;;  %v2301_v24 = vld [vmem:[%s6460_s7 + $0x188] sm:$0xff]  ;;  %v2284_v25 = vld [vmem:[%s6460_s7 + $0x100] sm:$0xff] }
 0x95e   :  { %4085 = vmatprep.subr.bf16.mxu0 %v4084_v56  ;;  %4112 = vmatprep.subr.bf16.mxu1 %v4436_v32  ;;  %v2254_v56 = vld [vmem:[%s6460_s7 + $0x10] sm:$0xff] }
 0x961   :  { %4087 = vmatpush3.bf16.msra.mxu0 %v4086_v26  ;;  %4114 = vmatpush1.bf16.msra.mxu1 %v4113_v35  ;;  %v4148_v26 = vpack.c.bf16 %v2255_v3, %v2254_v56  ;;  %v2493_v35 = vld [vmem:[%s6460_s7 + $0x788] sm:$0xff] }
 0x962   :  { %4089 = vmatprep.subr.bf16.mxu0 %v4088_v44  ;;  %4115 = vmatprep.subr.bf16.mxu1 %v4436_v32  ;;  %v2494_v44 = vld [vmem:[%s6460_s7 + $0x790] sm:$0xff] }
 0x963   :  { %v4131_v4 = vpack.c.bf16 %v2494_v44, %v2493_v35  ;;  %v2287_v35 = vld [vmem:[%s6460_s7 + $0x118] sm:$0xff]  ;;  %v2304_v44 = vld [vmem:[%s6460_s7 + $0x1a0] sm:$0xff] }
 0x965   :  { %4091 = vmatpush3.bf16.msra.mxu0 %v4090_v5  ;;  %4117 = vmatpush1.bf16.msra.mxu1 %v4116_v12  ;;  %v4152_v5 = vpack.c.bf16 %v2257_v49, %v2256_v46  ;;  %v2495_v12 = vld [vmem:[%s6460_s7 + $0x798] sm:$0xff]  ;;  %v4206_v49 = vpack.c.bf16 %v2333_v55, %v2332_v8  ;;  %v2325_v8 = vld [vmem:[%s6460_s7 + $0x248] sm:$0xff] }
 0x966   :  { %4093 = vmatprep.subr.bf16.mxu0 %v4092_v11  ;;  %4118 = vmatprep.subr.bf16.mxu1 %v4436_v32  ;;  %v2496_v11 = vld [vmem:[%s6460_s7 + $0x7a0] sm:$0xff]  ;;  %v2247_v46 = vld [vmem:[%s6454_s1 + $0x18] sm:$0xff] }
 0x967   :  { %v4134_v10 = vpack.c.bf16 %v2496_v11, %v2495_v12  ;;  %v2335_v12 = vld [vmem:[%s6460_s7 + $0x298] sm:$0xff]  ;;  %v2288_v11 = vld [vmem:[%s6460_s7 + $0x120] sm:$0xff] }
 0x968   :  { %v4184_v45 = vpack.c.bf16 %v2289_v13, %v2288_v11  ;;  %v2298_v11 = vld [vmem:[%s6460_s7 + $0x170] sm:$0xff]  ;;  %v2299_v13 = vld [vmem:[%s6460_s7 + $0x178] sm:$0xff] }
 0x969   :  { %4095 = vmatpush3.bf16.msra.mxu0 %v4094_v37  ;;  %4120 = vmatpush1.bf16.msra.mxu1 %v4119_v57  ;;  %v2497_v37 = vld [vmem:[%s6460_s7 + $0x7a8] sm:$0xff]  ;;  %v4158_v57 = vpack.c.bf16 %v2277_v53, %v2276_v21  ;;  %v4208_v21 = vpack.c.bf16 %v2317_v62, %v2316_v61  ;;  %v2306_v53 = vld [vmem:[%s6460_s7 + $0x1b0] sm:$0xff]  ;;  %v2327_v62 = vld [vmem:[%s6460_s7 + $0x258] sm:$0xff] }
 0x96a   :  { %4097 = vmatprep.subr.bf16.mxu0 %v4096_v27  ;;  %4121 = vmatprep.subr.bf16.mxu1 %v4436_v32  ;;  %v2278_v27 = vld [vmem:[%s6460_s7 + $0xd0] sm:$0xff]  ;;  %v4137_v29 = vpack.c.bf16 %v2498_v40, %v2497_v37  ;;  %v2249_v40 = vld [vmem:[%s6454_s1 + $0x28] sm:$0xff] }
 0x96b   :  { %v2168_v31 = vpop.f32.mrb[22].mxu0  ;;  %v5989_v22 = vpop.f32.mrb[18].mxu1  ;;  %v4162_v41 = vpack.c.bf16 %v2279_v51, %v2278_v27  ;;  %v2318_v37 = vld [vmem:[%s6460_s7 + $0x210] sm:$0xff]  ;;  %v2337_v27 = vld [vmem:[%s6460_s7 + $0x2a8] sm:$0xff] }
 0x96c   :  { %v2170_v14 = vpop.f32.mrb[23].mxu0  ;;  %v2241_v36 = vpop.f32.mrb[19].mxu1  ;;  %v2169_v28 = vadd.f32 %v2168_v31, %v1939_v16  ;;  %v2265_v31 = vld [vmem:[%s6460_s7 + $0x68] sm:$0xff]  ;;  %v2326_v61 = vld [vmem:[%s6460_s7 + $0x250] sm:$0xff] }
 0x96d   :  { %v2171_v38 = vadd.f32 %v2170_v14, %v1943_v1  ;;  %v2242_v33 = vadd.f32 %v2241_v36, %v1951_v47  ;;  %4099 = vmatpush3.bf16.msra.mxu0 %v4098_v2  ;;  %4123 = vmatpush1.bf16.msra.mxu1 %v4122_v6  ;;  %v2500_v1 = vld [vmem:[%s6460_s7 + $0x7c0] sm:$0xff]  ;;  %v2262_v47 = vld [vmem:[%s6460_s7 + $0x50] sm:$0xff]  ;;  %v2263_v2 = vld [vmem:[%s6460_s7 + $0x58] sm:$0xff]  ;;  %v1947_v14 = vrot.slane %v5806_v54, %v1946_v15 }
 0x96e   :  { %4124 = vmatprep.subr.bf16.mxu1 %v4436_v32  ;;  %4143 = vmatprep.subr.bf16.mxu0 %v4142_v63  ;;  %v2280_v6 = vld [vmem:[%s6460_s7 + $0xe0] sm:$0xff]  ;;  %v4140_v16 = vpack.c.bf16 %v2500_v1, %v2499_v59  ;;  %v4164_v63 = vpack.c.bf16 %v2263_v2, %v2262_v47  ;;  %v2285_v36 = vld [vmem:[%s6460_s7 + $0x108] sm:$0xff]  ;;  %v2303_v54 = vld [vmem:[%s6460_s7 + $0x198] sm:$0xff]  ;;  %v4214_v47 = vpack.c.bf16 %v2337_v27, %v2336_v60 }
 0x96f   :  { %2710 = vmatprep.mubr.f32.mxu0 %v2171_v38  ;;  %3119 = vmatprep.mubr.msk.f32.mxu1 %vm2502_vm1, %v2242_v33  ;;  %v4166_v0 = vpack.c.bf16 %v2281_v9, %v2280_v6  ;;  %v2283_v38 = vld [vmem:[%s6460_s7 + $0xf8] sm:$0xff]  ;;  %v4168_v33 = vpack.c.bf16 %v2265_v31, %v2264_v18  ;;  %v4176_v56 = vpack.c.bf16 %v2285_v36, %v2284_v25  ;;  %v2309_v1 = vld [vmem:[%s6460_s7 + $0x1c8] sm:$0xff]  ;;  %v2320_v2 = vld [vmem:[%s6460_s7 + $0x220] sm:$0xff] }
 0x970   :  { %2711 = vmatmul.mubr.f32.vlgmr.msra.gmra.mrb[26].mxu0 %v2169_v28  ;;  %v4174_v28 = vpack.c.bf16 %v2301_v24, %v2300_v48  ;;  %v2321_v6 = vld [vmem:[%s6460_s7 + $0x228] sm:$0xff]  ;;  %v2338_v15 = vld [vmem:[%s6460_s7 + $0x2b0] sm:$0xff]  ;;  %v2311_v24 = vld [vmem:[%s6460_s7 + $0x1d8] sm:$0xff] }
 0x971   :  { %4126 = vmatpush1.bf16.msra.mxu1 %v4125_v23  ;;  %4145 = vmatpush3.bf16.msra.mxu0 %v4144_v34  ;;  %v2282_v23 = vld [vmem:[%s6460_s7 + $0xf0] sm:$0xff]  ;;  %v2293_v18 = vld [vmem:[%s6460_s7 + $0x148] sm:$0xff]  ;;  %v4216_v31 = vpack.c.bf16 %v2321_v6, %v2320_v2  ;;  %v2323_v36 = vld [vmem:[%s6460_s7 + $0x238] sm:$0xff] }
 0x972   :  { %4127 = vmatprep.subr.bf16.mxu1 %v4436_v32  ;;  %4147 = vmatprep.subr.bf16.mxu0 %v4146_v42  ;;  %v2302_v34 = vld [vmem:[%s6460_s7 + $0x190] sm:$0xff]  ;;  %v4170_v3 = vpack.c.bf16 %v2283_v38, %v2282_v23  ;;  %v2340_v38 = vld [vmem:[%s6460_s7 + $0x2c0] sm:$0xff] }
 0x973   :  { %2853 = vmatprep.mubr.f32.mxu0 %v2245_v17  ;;  %v2266_v42 = vld [vmem:[%s6460_s7 + $0x70] sm:$0xff]  ;;  %v2240_v17 = vadd.f32 %v5989_v22, %v1947_v14  ;;  %v2305_v22 = vld [vmem:[%s6460_s7 + $0x1a8] sm:$0xff] }
 0x974   :  { %v2310_v48 = vld [vmem:[%s6460_s7 + $0x1d0] sm:$0xff] }
 0x975   :  { %4129 = vmatpush1.bf16.msra.mxu1 %v4128_v19  ;;  %4149 = vmatpush3.bf16.msra.mxu0 %v4148_v26  ;;  %v4178_v19 = vpack.c.bf16 %v2303_v54, %v2302_v34  ;;  %v2286_v26 = vld [vmem:[%s6460_s7 + $0x110] sm:$0xff]  ;;  %v4194_v34 = vpack.c.bf16 %v2311_v24, %v2310_v48  ;;  %v2356_v48 = vld [vmem:[%s6460_s7 + $0x340] sm:$0xff]  ;;  %v2357_v24 = vld [vmem:[%s6460_s7 + $0x348] sm:$0xff] }
 0x976   :  { %4130 = vmatprep.subr.bf16.mxu1 %v4436_v32  ;;  %4151 = vmatprep.subr.bf16.mxu0 %v4150_v43  ;;  %v4172_v43 = vpack.c.bf16 %v2267_v52, %v2266_v42  ;;  %v2322_v14 = vld [vmem:[%s6460_s7 + $0x230] sm:$0xff]  ;;  %v2312_v42 = vld [vmem:[%s6460_s7 + $0x1e0] sm:$0xff]  ;;  %v2313_v52 = vld [vmem:[%s6460_s7 + $0x1e8] sm:$0xff] }
 0x977   :  { %v2294_v54 = vld [vmem:[%s6460_s7 + $0x150] sm:$0xff] }
 0x979   :  { %4132 = vmatpush1.bf16.msra.mxu1 %v4131_v4  ;;  %4153 = vmatpush3.bf16.msra.mxu0 %v4152_v5  ;;  %v4180_v4 = vpack.c.bf16 %v2287_v35, %v2286_v26  ;;  %v2334_v5 = vld [vmem:[%s6460_s7 + $0x290] sm:$0xff]  ;;  %v4198_v26 = vpack.c.bf16 %v2313_v52, %v2312_v42  ;;  %v2296_v35 = vld [vmem:[%s6460_s7 + $0x160] sm:$0xff]  ;;  %v2365_v52 = vld [vmem:[%s6460_s7 + $0x388] sm:$0xff] }
 0x97a   :  { %4133 = vmatprep.subr.bf16.mxu1 %v4436_v32  ;;  %4155 = vmatprep.subr.bf16.mxu0 %v4154_v50  ;;  %v4182_v50 = vpack.c.bf16 %v2305_v22, %v2304_v44  ;;  %v2314_v22 = vld [vmem:[%s6460_s7 + $0x1f0] sm:$0xff]  ;;  %v2364_v42 = vld [vmem:[%s6460_s7 + $0x380] sm:$0xff] }
 0x97d   :  { %4135 = vmatpush1.bf16.msra.mxu1 %v4134_v10  ;;  %4157 = vmatpush3.bf16.msra.mxu0 %v4156_v30  ;;  %v2307_v10 = vld [vmem:[%s6460_s7 + $0x1b8] sm:$0xff]  ;;  %v4210_v30 = vpack.c.bf16 %v2335_v12, %v2334_v5  ;;  %v2344_v5 = vld [vmem:[%s6460_s7 + $0x2e0] sm:$0xff]  ;;  %v2345_v12 = vld [vmem:[%s6460_s7 + $0x2e8] sm:$0xff] }
 0x97e   :  { %4136 = vmatprep.subr.bf16.mxu1 %v4436_v32  ;;  %4159 = vmatprep.subr.bf16.mxu0 %v4158_v57  ;;  %v2319_v57 = vld [vmem:[%s6460_s7 + $0x218] sm:$0xff]  ;;  %v4186_v51 = vpack.c.bf16 %v2307_v10, %v2306_v53  ;;  %v2328_v53 = vld [vmem:[%s6460_s7 + $0x260] sm:$0xff]  ;;  %v2329_v10 = vld [vmem:[%s6460_s7 + $0x268] sm:$0xff] }
 0x97f   :  { %v4212_v59 = vpack.c.bf16 %v2319_v57, %v2318_v37  ;;  %v2346_v37 = vld [vmem:[%s6460_s7 + $0x2f0] sm:$0xff]  ;;  %v2347_v57 = vld [vmem:[%s6460_s7 + $0x2f8] sm:$0xff]  ;;  %v4232_v60 = vpack.c.bf16 %v2329_v10, %v2328_v53 }
 0x980   :  { %v4234_v27 = vpack.c.bf16 %v2347_v57, %v2346_v37 }
 0x981   :  { %4138 = vmatpush1.bf16.msra.mxu1 %v4137_v29  ;;  %4161 = vmatpush3.bf16.msra.mxu0 %v4160_v58  ;;  %v2290_v29 = vld [vmem:[%s6460_s7 + $0x130] sm:$0xff]  ;;  %v2291_v58 = vld [vmem:[%s6460_s7 + $0x138] sm:$0xff] }
 0x982   :  { %4139 = vmatprep.subr.bf16.mxu1 %v4436_v32  ;;  %4163 = vmatprep.subr.bf16.mxu0 %v4162_v41  ;;  %v2308_v41 = vld [vmem:[%s6460_s7 + $0x1c0] sm:$0xff]  ;;  %v4188_v9 = vpack.c.bf16 %v2291_v58, %v2290_v29  ;;  %v2331_v29 = vld [vmem:[%s6460_s7 + $0x278] sm:$0xff]  ;;  %v2246_v58 = vld [vmem:[%s6454_s1 + $0x10] sm:$0xff] }
 0x985   :  { %4141 = vmatpush1.bf16.msra.mxu1 %v4140_v16  ;;  %4165 = vmatpush3.bf16.msra.mxu0 %v4164_v63  ;;  %v2339_v16 = vld [vmem:[%s6460_s7 + $0x2b8] sm:$0xff]  ;;  %v4190_v63 = vpack.c.bf16 %v2309_v1, %v2308_v41  ;;  %v2350_v41 = vld [vmem:[%s6460_s7 + $0x310] sm:$0xff] }
 0x986   :  { %2772 = vmatprep.subr.mxu1 %v4435_v7  ;;  %4167 = vmatprep.subr.bf16.mxu0 %v4166_v0  ;;  %v2292_v0 = vld [vmem:[%s6460_s7 + $0x140] sm:$0xff]  ;;  %v4218_v25 = vpack.c.bf16 %v2339_v16, %v2338_v15  ;;  %v2351_v1 = vld [vmem:[%s6460_s7 + $0x318] sm:$0xff]  ;;  %v2353_v15 = vld [vmem:[%s6460_s7 + $0x328] sm:$0xff] }
 0x987   :  { %v4192_v23 = vpack.c.bf16 %v2293_v18, %v2292_v0  ;;  %v4242_v6 = vpack.c.bf16 %v2351_v1, %v2350_v41  ;;  %v2248_v16 = vld [vmem:[%s6454_s1 + $0x20] sm:$0xff]  ;;  %v2354_v0 = vld [vmem:[%s6460_s7 + $0x330] sm:$0xff]  ;;  %v2355_v18 = vld [vmem:[%s6460_s7 + $0x338] sm:$0xff] }
 0x989   :  { %2773 = vmatpush1.msra.mxu1 %v2501_v39  ;;  %4169 = vmatpush3.bf16.msra.mxu0 %v4168_v33  ;;  %v2341_v33 = vld [vmem:[%s6460_s7 + $0x2c8] sm:$0xff]  ;;  %v2295_v39 = vld [vmem:[%s6460_s7 + $0x158] sm:$0xff] }
 0x98a   :  { %2781 = vmatmul.mubr.f32.vlgmr.msra.gmra.mrb[22].mxu1 %v2240_v17  ;;  %4175 = vmatprep.subr.bf16.mxu1 %v4174_v28  ;;  %v4220_v28 = vpack.c.bf16 %v2323_v36, %v2322_v14  ;;  %v4196_v55 = vpack.c.bf16 %v2295_v39, %v2294_v54  ;;  %v2342_v17 = vld [vmem:[%s6460_s7 + $0x2d0] sm:$0xff]  ;;  %v2359_v36 = vld [vmem:[%s6460_s7 + $0x358] sm:$0xff] }
 0x98b   :  { %4177 = vmatpush3.bf16.msra.mxu1 %v4176_v56  ;;  %4171 = vmatprep.subr.bf16.mxu0 %v4170_v3  ;;  %v4222_v56 = vpack.c.bf16 %v2341_v33, %v2340_v38  ;;  %v2324_v3 = vld [vmem:[%s6460_s7 + $0x240] sm:$0xff]  ;;  %v2358_v14 = vld [vmem:[%s6460_s7 + $0x350] sm:$0xff]  ;;  %v2361_v33 = vld [vmem:[%s6460_s7 + $0x368] sm:$0xff] }
 0x98c   :  { %4179 = vmatprep.subr.bf16.mxu1 %v4178_v19  ;;  %2923 = vmatprep.mubr.f32.mxu1 %v2247_v46  ;;  %v2343_v19 = vld [vmem:[%s6460_s7 + $0x2d8] sm:$0xff]  ;;  %v4224_v44 = vpack.c.bf16 %v2325_v8, %v2324_v3  ;;  %v2360_v38 = vld [vmem:[%s6460_s7 + $0x360] sm:$0xff]  ;;  %v2362_v54 = vld [vmem:[%s6460_s7 + $0x370] sm:$0xff] }
 0x98d   :  { %4173 = vmatpush3.bf16.msra.mxu0 %v4172_v43  ;;  %v2297_v43 = vld [vmem:[%s6460_s7 + $0x168] sm:$0xff]  ;;  %v2315_v46 = vld [vmem:[%s6460_s7 + $0x1f8] sm:$0xff]  ;;  %v2366_v3 = vld [vmem:[%s6460_s7 + $0x390] sm:$0xff] }
 0x98e   :  { %4207 = vmatprep.subr.bf16.mxu0 %v4206_v49  ;;  %v4226_v49 = vpack.c.bf16 %v2343_v19, %v2342_v17  ;;  %v2363_v39 = vld [vmem:[%s6460_s7 + $0x378] sm:$0xff]  ;;  %v2368_v17 = vld [vmem:[%s6460_s7 + $0x3a0] sm:$0xff]  ;;  %v2369_v19 = vld [vmem:[%s6460_s7 + $0x3a8] sm:$0xff] }
 0x98f   :  { %4181 = vmatpush3.bf16.msra.mxu1 %v4180_v4  ;;  %v4200_v4 = vpack.c.bf16 %v2297_v43, %v2296_v35  ;;  %v2367_v8 = vld [vmem:[%s6460_s7 + $0x398] sm:$0xff]  ;;  %v2370_v35 = vld [vmem:[%s6460_s7 + $0x3b0] sm:$0xff] }
 0x990   :  { %2854 = vmatmul.mubr.f32.vlgmr.msra.gmra.mrb[28].mxu0 %v2244_v20  ;;  %4183 = vmatprep.subr.bf16.mxu1 %v4182_v50  ;;  %v4202_v50 = vpack.c.bf16 %v2315_v46, %v2314_v22  ;;  %v4228_v20 = vpack.c.bf16 %v2327_v62, %v2326_v61  ;;  %v2371_v43 = vld [vmem:[%s6460_s7 + $0x3b8] sm:$0xff]  ;;  %v2372_v22 = vld [vmem:[%s6460_s7 + $0x3c0] sm:$0xff]  ;;  %v2373_v46 = vld [vmem:[%s6460_s7 + $0x3c8] sm:$0xff] }
 0x991   :  { %4209 = vmatpush3.bf16.msra.mxu0 %v4208_v21  ;;  %2993 = vmatprep.mubr.f32.mxu0 %v2249_v40  ;;  %v4230_v21 = vpack.c.bf16 %v2345_v12, %v2344_v5  ;;  %v2348_v40 = vld [vmem:[%s6460_s7 + $0x300] sm:$0xff]  ;;  %v2374_v61 = vld [vmem:[%s6460_s7 + $0x3d0] sm:$0xff]  ;;  %v2375_v62 = vld [vmem:[%s6460_s7 + $0x3d8] sm:$0xff] }
 0x992   :  { %4211 = vmatprep.subr.bf16.mxu0 %v4210_v30  ;;  %v4204_v30 = vpack.c.bf16 %v2299_v13, %v2298_v11  ;;  %v2376_v5 = vld [vmem:[%s6460_s7 + $0x3e0] sm:$0xff]  ;;  %v2250_v12 = vld [vmem:[%s6454_s1 + $0x30] sm:$0xff] }
 0x993   :  { %4185 = vmatpush3.bf16.msra.mxu1 %v4184_v45  ;;  %v2349_v45 = vld [vmem:[%s6460_s7 + $0x308] sm:$0xff] }
 0x994   :  { %4187 = vmatprep.subr.bf16.mxu1 %v4186_v51  ;;  %v2330_v51 = vld [vmem:[%s6460_s7 + $0x270] sm:$0xff] }
 0x995   :  { %4213 = vmatpush3.bf16.msra.mxu0 %v4212_v59  ;;  %v4239_v59 = vpack.c.bf16 %v2349_v45, %v2348_v40  ;;  %v4236_v2 = vpack.c.bf16 %v2331_v29, %v2330_v51 }
 0x996   :  { %4215 = vmatprep.subr.bf16.mxu0 %v4214_v47  ;;  %v2251_v47 = vld [vmem:[%s6454_s1 + $0x38] sm:$0xff] }
 0x997   :  { %4189 = vmatpush3.bf16.msra.mxu1 %v4188_v9  ;;  %v2352_v9 = vld [vmem:[%s6460_s7 + $0x320] sm:$0xff] }
 0x998   :  { %4191 = vmatprep.subr.bf16.mxu1 %v4190_v63  ;;  %v4245_v63 = vpack.c.bf16 %v2353_v15, %v2352_v9 }
 0x999   :  { %4217 = vmatpush3.bf16.msra.mxu0 %v4216_v31  ;;  %v4248_v31 = vpack.c.bf16 %v2355_v18, %v2354_v0 }
 0x99a   :  { %4219 = vmatprep.subr.bf16.mxu0 %v4218_v25  ;;  %v4251_v25 = vpack.c.bf16 %v2357_v24, %v2356_v48 }
 0x99b   :  { %4193 = vmatpush3.bf16.msra.mxu1 %v4192_v23  ;;  %v4254_v23 = vpack.c.bf16 %v2359_v36, %v2358_v14 }
 0x99c   :  { %4195 = vmatprep.subr.bf16.mxu1 %v4194_v34  ;;  %v4257_v34 = vpack.c.bf16 %v2361_v33, %v2360_v38 }
 0x99d   :  { %4221 = vmatpush3.bf16.msra.mxu0 %v4220_v28  ;;  %v4260_v28 = vpack.c.bf16 %v2363_v39, %v2362_v54 }
 0x99e   :  { %4223 = vmatprep.subr.bf16.mxu0 %v4222_v56  ;;  %v4263_v56 = vpack.c.bf16 %v2365_v52, %v2364_v42 }
 0x99f   :  { %4197 = vmatpush3.bf16.msra.mxu1 %v4196_v55  ;;  %v4266_v55 = vpack.c.bf16 %v2367_v8, %v2366_v3 }
 0x9a0   :  { %4199 = vmatprep.subr.bf16.mxu1 %v4198_v26  ;;  %v4269_v26 = vpack.c.bf16 %v2369_v19, %v2368_v17 }
 0x9a1   :  { %4225 = vmatpush3.bf16.msra.mxu0 %v4224_v44  ;;  %v4272_v44 = vpack.c.bf16 %v2371_v43, %v2370_v35 }
 0x9a2   :  { %4227 = vmatprep.subr.bf16.mxu0 %v4226_v49  ;;  %v4275_v49 = vpack.c.bf16 %v2373_v46, %v2372_v22 }
 0x9a3   :  { %4201 = vmatpush3.bf16.msra.mxu1 %v4200_v4  ;;  %v4278_v4 = vpack.c.bf16 %v2375_v62, %v2374_v61 }
 0x9a4   :  { %4203 = vmatprep.subr.bf16.mxu1 %v4202_v50 }
 0x9a5   :  { %4229 = vmatpush3.bf16.msra.mxu0 %v4228_v20 }
 0x9a6   :  { %4231 = vmatprep.subr.bf16.mxu0 %v4230_v21 }
 0x9a7   :  { %4205 = vmatpush3.bf16.msra.mxu1 %v4204_v30 }
 0x9a8   :  { %4238 = vmatprep.subr.bf16.mxu1 %v4436_v32 }
 0x9a9   :  { %4233 = vmatpush3.bf16.msra.mxu0 %v4232_v60 }
 0x9aa   :  { %2924 = vmatmul.mubr.f32.vlgmr.msra.gmra.mrb[24].mxu1 %v2246_v58  ;;  %4235 = vmatprep.subr.bf16.mxu0 %v4234_v27 }
 0x9ab   :  { %4240 = vmatpush1.bf16.msra.mxu1 %v4239_v59  ;;  %3120 = vmatprep.mubr.msk.f32.mxu1 %vm2502_vm1, %v2251_v47 }
 0x9ac   :  { %4241 = vmatprep.subr.bf16.mxu1 %v4436_v32 }
 0x9ad   :  { %4237 = vmatpush3.bf16.msra.mxu0 %v4236_v2 }
 0x9af   :  { %4243 = vmatpush1.bf16.msra.mxu1 %v4242_v6 }
 0x9b0   :  { %2994 = vmatmul.mubr.f32.vlgmr.msra.gmra.mrb[30].mxu0 %v2248_v16  ;;  %4244 = vmatprep.subr.bf16.mxu1 %v4436_v32  ;;  %v3121_v16 = vld [vmem:[%s6461_s8] ss:$0 sm:$0xff] }
 0x9b3   :  { %4246 = vmatpush1.bf16.msra.mxu1 %v4245_v63 }
 0x9b4   :  { %4247 = vmatprep.subr.bf16.mxu1 %v4436_v32 }
 0x9b7   :  { %4249 = vmatpush1.bf16.msra.mxu1 %v4248_v31 }
 0x9b8   :  { %4250 = vmatprep.subr.bf16.mxu1 %v4436_v32 }
 0x9bb   :  { %4252 = vmatpush1.bf16.msra.mxu1 %v4251_v25 }
 0x9bc   :  { %4253 = vmatprep.subr.bf16.mxu1 %v4436_v32 }
 0x9bf   :  { %4255 = vmatpush1.bf16.msra.mxu1 %v4254_v23 }
 0x9c0   :  { %4256 = vmatprep.subr.bf16.mxu1 %v4436_v32 }
 0x9c3   :  { %4258 = vmatpush1.bf16.msra.mxu1 %v4257_v34 }
 0x9c4   :  { %4259 = vmatprep.subr.bf16.mxu1 %v4436_v32 }
 0x9c7   :  { %4261 = vmatpush1.bf16.msra.mxu1 %v4260_v28 }
 0x9c8   :  { %4262 = vmatprep.subr.bf16.mxu1 %v4436_v32 }
 0x9cb   :  { %4264 = vmatpush1.bf16.msra.mxu1 %v4263_v56 }
 0x9cc   :  { %4265 = vmatprep.subr.bf16.mxu1 %v4436_v32 }
 0x9cf   :  { %4267 = vmatpush1.bf16.msra.mxu1 %v4266_v55 }
 0x9d0   :  { %4268 = vmatprep.subr.bf16.mxu1 %v4436_v32 }
 0x9d3   :  { %4270 = vmatpush1.bf16.msra.mxu1 %v4269_v26 }
 0x9d4   :  { %4271 = vmatprep.subr.bf16.mxu1 %v4436_v32 }
 0x9d7   :  { %4273 = vmatpush1.bf16.msra.mxu1 %v4272_v44 }
 0x9d8   :  { %4274 = vmatprep.subr.bf16.mxu1 %v4436_v32 }
 0x9db   :  { %4276 = vmatpush1.bf16.msra.mxu1 %v4275_v49 }
 0x9dc   :  { %4277 = vmatprep.subr.bf16.mxu1 %v4436_v32 }
 0x9df   :  { %4279 = vmatpush1.bf16.msra.mxu1 %v4278_v4 }
 0x9e0   :  { %3055 = vmatprep.subr.mxu1 %v4435_v7 }
 0x9e3   :  { %3056 = vmatpush1.msra.mxu1 %v2376_v5 }
 0x9e4   :  { %3064 = vmatmul.mubr.f32.vlgmr.msra.gmra.mrb[26].mxu1 %v2250_v12 }
 0xa23   :  { %v3154_v50 = vpop.f32.mrb[24].mxu0  ;;  %v3189_v11 = vpop.f32.mrb[20].mxu1 }
 0xa24   :  { %v3155_v13 = vpop.f32.mrb[25].mxu0  ;;  %v3190_v20 = vpop.f32.mrb[21].mxu1 }
 0xa25   :  { %v3156_v21 = vadd.f32 %v3155_v13, %v3154_v50  ;;  %v3191_v53 = vadd.f32 %v3190_v20, %v3189_v11 }
 0xa27   :  { %v2643_v32 = vadd.f32 %v3191_v53, %v3156_v21 }
 0xa43   :  { %v3224_v10 = vpop.f32.mrb[26].mxu0 }
 0xa44   :  { %v3225_v30 = vpop.f32.mrb[27].mxu0 }
 0xa45   :  { %v3226_v7 = vadd.f32 %v3225_v30, %v3224_v10 }
 0xa47   :  { %v2713_v37 = vadd.f32 %v3226_v7, %v2643_v32 }
 0xa5d   :  { %v2782_v57 = vpop.f32.mrb[22].mxu1 }
 0xa5e   :  { %v2783_v40 = vadd.f32 %v2782_v57, %v2713_v37  ;;  %v2784_v45 = vpop.f32.mrb[23].mxu1 }
 0xa63   :  { %v3259_v60 = vpop.f32.mrb[28].mxu0 }
 0xa64   :  { %v3260_v27 = vpop.f32.mrb[29].mxu0 }
 0xa65   :  { %v3261_v51 = vadd.f32 %v3260_v27, %v3259_v60 }
 0xa67   :  { %v2856_v29 = vadd.f32 %v3261_v51, %v2783_v40 }
 0xa7d   :  { %v3294_v58 = vpop.f32.mrb[24].mxu1 }
 0xa7e   :  { %v3295_v59 = vpop.f32.mrb[25].mxu1 }
 0xa7f   :  { %v3296_v41 = vadd.f32 %v3295_v59, %v3294_v58 }
 0xa81   :  { %v2926_v1 = vadd.f32 %v3296_v41, %v2856_v29 }
 0xa83   :  { %v3329_v47 = vpop.f32.mrb[30].mxu0 }
 0xa84   :  { %v3330_v2 = vpop.f32.mrb[31].mxu0 }
 0xa85   :  { %v3331_v6 = vadd.f32 %v3330_v2, %v3329_v47 }
 0xa87   :  { %v2996_v9 = vadd.f32 %v3331_v6, %v2926_v1 }
 0xab7   :  { %v3065_v15 = vpop.f32.mrb[26].mxu1 }
 0xab8   :  { %v3066_v63 = vadd.f32 %v3065_v15, %v2996_v9  ;;  %v3067_v0 = vpop.f32.mrb[27].mxu1 }
 0xaba   :  { %v3076_v18 = vadd.f32 %v3121_v16, %v3066_v63 }
 0xabc   :  { %3078 = vst.msk [vmem:[#allocation3] sm:$0xff] %vm3077_vm2, %v3076_v18 }
 0xabd   :  { %4422 = shalt.err (!%p4419_p4)
}
 0xabe   :  { %s4423_s20 = scalar_lea.hbm %s6462_s9, 128 }
 0xabf   :  { %p4424_p5 = scmp.ne.s32.totalorder %s6462_s9, %s4423_s20  ;;  %p4427_p6 = scmp.lt.u32.totalorder %s4423_s20, %s6462_s9 }
 0xac1   :  { %p4429_p7 = pnand %p4427_p6, %p4424_p5 }
 0xac3   :  { %4432 = shalt.err (!%p4429_p7)
}
 0xac4   :  { %3088 = dma.vmem_to_hbm [thread:$0]  %s3086_s17, 128, %s6462_s9, [#allocation4]  }
 0xac5   :  { %4433 = dma.done.wait [#allocation4], 128  }
 0xac6   :  { %4434 = vsyncadd [#allocation4], 4294967168 }
 0xac7   :  { %3092 = vsyncpa [#allocation4], 1 }

</bundles_post_ra>
